<compile_context>
chip_gen: v5e
topology: v5e:2x2
jax: 0.10.0
libtpu: 0.0.40
codegen_flags: <defaults>
</compile_context>

<pallas_src>
import functools

import jax
import jax.numpy as jnp
from jax.experimental import pallas as pl
from jax.experimental.pallas import tpu as pltpu

HIDDEN = [32, 64, 64]
KSIZE = [8, 4, 3]
STRIDE = [4, 2, 1]


def _round_up(x, m):
    return (x + m - 1) // m * m


def _vmem_capacity_bytes():
    """Generation-aware VMEM capacity, conservative (v7x) fallback."""
    try:
        info = pltpu.get_tpu_info()
        for name in ("vmem_capacity_bytes", "vmem_size_bytes", "vmem_bytes"):
            val = getattr(info, name, None)
            if val:
                return int(val)
    except Exception:
        pass
    return 64 << 20


def _tiled_bytes(shape, itemsize):
    """VMEM footprint of an array including (sublane, lane) tiling padding."""
    sub = {1: 32, 2: 16, 4: 8}.get(itemsize, 8)
    lanes = _round_up(shape[-1], 128)
    subl = _round_up(shape[-2] if len(shape) >= 2 else 1, sub)
    lead = 1
    for d in shape[:-2]:
        lead *= d
    return lead * subl * lanes * itemsize


def _output_spatial(H, W):
    sizes = []
    h, w = H, W
    for ks, st in zip(KSIZE, STRIDE):
        h = (h - ks) // st + 1
        w = (w - ks) // st + 1
        sizes.append((h, w))
    return sizes


# ----------------------------------------------------------------------------
# Fused encoder kernel: conv0 -> conv1 -> conv2 -> Linear, all in VMEM.
# ----------------------------------------------------------------------------
def _encoder_kernel(x_ref, w0_ref, b0_ref, w1_ref, b1_ref, w2_ref, b2_ref,
                    wl_ref, bl_ref, o_ref, *, geom):
    (oh0, ow0, oh1, ow1, oh2, ow2, oc0, oc1, oc2) = geom
    tb = x_ref.shape[0]

    # ---- conv0: 2x2 stride-1 window over the space-to-depth grid (in-kernel
    # im2col: 4 static slices + lane concat -> one K=64*C MXU matmul). --------
    x = x_ref[...]                                          # [tb, Hs, Ws, 16*C]
    pieces = [x[:, a:a + oh0, b:b + ow0, :]
              for a in range(2) for b in range(2)]
    cols0 = jnp.concatenate(pieces, axis=-1)                # [tb, oh0, ow0, 64*C]
    cols0 = cols0.reshape(tb * oh0 * ow0, cols0.shape[-1])
    h0 = jnp.dot(cols0, w0_ref[...], preferred_element_type=jnp.float32)
    h0 = jnp.maximum(h0 + b0_ref[...], 0.0).astype(jnp.bfloat16)
    h0 = h0.reshape(tb, oh0, ow0, oc0)                      # NHWC, true width

    # ---- conv1: 4x4 kernel / stride 2, per output position -----------------
    h1 = {}
    for p in range(oh1):
        for q in range(ow1):
            win = jnp.concatenate(
                [h0[:, 2 * p + i, 2 * q + j, :]
                 for i in range(4) for j in range(4)], axis=-1)   # [tb, 16*oc0]
            v = jnp.dot(win, w1_ref[...], preferred_element_type=jnp.float32)
            h1[(p, q)] = jnp.maximum(v + b1_ref[...], 0.0).astype(jnp.bfloat16)

    # ---- conv2 (3x3 / stride 1) fused with the final Linear ----------------
    acc = jnp.zeros((tb, o_ref.shape[-1]), jnp.float32) + bl_ref[...]
    for p in range(oh2):
        for q in range(ow2):
            win = jnp.concatenate(
                [h1[(p + i, q + j)] for i in range(3) for j in range(3)],
                axis=-1)                                          # [tb, 9*oc1]
            v = jnp.dot(win, w2_ref[...], preferred_element_type=jnp.float32)
            h2 = jnp.maximum(v + b2_ref[...], 0.0).astype(jnp.bfloat16)
            r0 = (p * ow2 + q) * oc2
            acc = acc + jnp.dot(h2, wl_ref[r0:r0 + oc2, :],
                                preferred_element_type=jnp.float32)
    o_ref[0] = acc.astype(o_ref.dtype)


def _run_encoder(x_s2d, pp, *, geom):
    B, Hs, Ws, c16 = x_s2d.shape
    (oh0, ow0, oh1, ow1, oh2, ow2, oc0, oc1, oc2) = geom
    w0, b0 = pp["w0"], pp["b0"]
    w1, b1 = pp["w1"], pp["b1"]
    w2, b2 = pp["w2"], pp["b2"]
    wl, bl = pp["wl"], pp["bl"]
    E = bl.shape[1]

    # ---- batch tile from a generation-aware VMEM budget ---------------------
    cap = _vmem_capacity_bytes()
    budget = int(cap * 0.45)
    weight_bytes = sum(_tiled_bytes(a.shape, a.dtype.itemsize)
                       for a in (w0, b0, w1, b1, w2, b2, wl, bl))
    per_img = (2 * _tiled_bytes((Hs, Ws, c16), 2)          # double-buffered x tile
               + _tiled_bytes((oh0, ow0, 4 * c16), 2)      # cols0 (bf16)
               + _tiled_bytes((oh0 * ow0, 4 * c16), 2)     # cols0 reshaped
               + _tiled_bytes((oh0 * ow0, oc0), 4)         # h0 f32
               + _tiled_bytes((oh0, ow0, oc0), 2)          # h0 bf16
               + oh1 * ow1 * (_tiled_bytes((1, 16 * oc0), 2)
                              + _tiled_bytes((1, oc1), 4)))
    per_img = 4 * per_img + (64 << 10)                     # relayout-temp headroom
    tb = max(1, min((budget - 2 * weight_bytes) // per_img, 128))
    if B >= 2:
        tb = min(tb, (B + 1) // 2)      # >= 2 grid steps: pipeline + megacore
    tb = max(1, min(tb, B))

    nsteps = -(-B // tb)
    b_pad = nsteps * tb
    if b_pad != B:
        x_s2d = jnp.pad(x_s2d, ((0, b_pad - B), (0, 0), (0, 0), (0, 0)))

    kernel = functools.partial(_encoder_kernel, geom=geom)
    flops = 2 * b_pad * (oh0 * ow0 * (4 * c16) * oc0
                         + oh1 * ow1 * (16 * oc0) * oc1
                         + oh2 * ow2 * (9 * oc1) * oc2
                         + oh2 * ow2 * oc2 * E)
    bytes_accessed = (b_pad * Hs * Ws * c16 * 2 + b_pad * E * 4
                      + sum(int(a.size) * a.dtype.itemsize
                            for a in (w0, b0, w1, b1, w2, b2, wl, bl)))

    out = pl.pallas_call(
        kernel,
        out_shape=jax.ShapeDtypeStruct((nsteps, tb, E), jnp.float32),
        grid=(nsteps,),
        in_specs=[
            pl.BlockSpec((tb, Hs, Ws, c16), lambda i: (i, 0, 0, 0)),  # streamed
            pl.BlockSpec(w0.shape, lambda i: (0, 0)),   # weights/biases: grid-
            pl.BlockSpec(b0.shape, lambda i: (0, 0)),   # invariant -> DMA'd once,
            pl.BlockSpec(w1.shape, lambda i: (0, 0)),   # VMEM resident
            pl.BlockSpec(b1.shape, lambda i: (0, 0)),
            pl.BlockSpec(w2.shape, lambda i: (0, 0)),
            pl.BlockSpec(b2.shape, lambda i: (0, 0)),
            pl.BlockSpec(wl.shape, lambda i: (0, 0)),
            pl.BlockSpec(bl.shape, lambda i: (0, 0)),
        ],
        out_specs=pl.BlockSpec((1, tb, E), lambda i: (i, 0, 0)),
        compiler_params=pltpu.CompilerParams(
            dimension_semantics=("parallel",),           # megacore on v7x
            vmem_limit_bytes=int(cap * 0.55),
        ),
        cost_estimate=pl.CostEstimate(flops=flops, transcendentals=0,
                                      bytes_accessed=bytes_accessed),
    )(x_s2d, w0, b0, w1, b1, w2, b2, wl, bl)
    out = out.reshape(b_pad, E)
    return out[:B] if b_pad != B else out


# ----------------------------------------------------------------------------
# One-time parameter preprocessing (hoisted out of the jitted forward).
# ----------------------------------------------------------------------------
def prepare_params(params, obs_dim, embedding_dim):
    C, H, W = obs_dim
    oc0, oc1, oc2 = HIDDEN
    (_, _), (_, _), (oh2, ow2) = _output_spatial(H, W)
    E = embedding_dim

    # conv0 [OC,C,8,8] -> rows (a, b, rh, rw, c): matches the in-kernel
    # (2x2 window offset, space-to-depth channel) concat order.
    w0 = params["conv0_w"].reshape(oc0, C, 2, 4, 2, 4)
    w0 = w0.transpose(2, 4, 3, 5, 1, 0).reshape(64 * C, oc0)
    # conv1/conv2 [OC,C,k,k] -> rows (i, j, c).
    w1 = params["conv1_w"].transpose(2, 3, 1, 0).reshape(16 * oc0, oc1)
    w2 = params["conv2_w"].transpose(2, 3, 1, 0).reshape(9 * oc1, oc2)
    # Linear: PyTorch Flatten is channel-major (c, h, w); permute rows to the
    # kernel's (h, w, c) accumulation order.
    wl = params["lin_w"].reshape(E, oc2, oh2, ow2)
    wl = wl.transpose(2, 3, 1, 0).reshape(oh2 * ow2 * oc2, E)

    return {
        "w0": w0.astype(jnp.bfloat16),
        "b0": params["conv0_b"].reshape(1, oc0).astype(jnp.float32),
        "w1": w1.astype(jnp.bfloat16),
        "b1": params["conv1_b"].reshape(1, oc1).astype(jnp.float32),
        "w2": w2.astype(jnp.bfloat16),
        "b2": params["conv2_b"].reshape(1, oc2).astype(jnp.float32),
        "wl": wl.astype(jnp.bfloat16),
        "bl": params["lin_b"].reshape(1, E).astype(jnp.float32),
    }


# ----------------------------------------------------------------------------
# ConvEncoder forward
# ----------------------------------------------------------------------------
def conv_encoder_forward(x, prepared):
    """x: NCHW float32 [B, C, H, W] -> [B, embedding_dim] float32."""
    B, C, H, W = x.shape
    (oh0, ow0), (oh1, ow1), (oh2, ow2) = _output_spatial(H, W)
    assert oh0 >= 4 and ow0 >= 4 and oh1 >= 3 and ow1 >= 3, "obs too small"

    # Crop to the exact conv0 receptive extent (matches PyTorch floor arith),
    # cast to bf16 BEFORE any layout op, then space-to-depth by stride 4
    # (pure layout; no im2col duplication ever hits HBM).
    h_use, w_use = 4 * oh0 + 4, 4 * ow0 + 4
    hs, ws = h_use // 4, w_use // 4
    x = x[:, :, :h_use, :w_use].astype(jnp.bfloat16)
    x = x.reshape(B, C, hs, 4, ws, 4).transpose(0, 2, 4, 3, 5, 1)
    x = x.reshape(B, hs, ws, 16 * C)

    geom = (oh0, ow0, oh1, ow1, oh2, ow2, HIDDEN[0], HIDDEN[1], HIDDEN[2])
    return _run_encoder(x, prepared, geom=geom)


# ----------------------------------------------------------------------------
# Synthetic parameters + pure-JAX f32 reference (PyTorch semantics).
# ----------------------------------------------------------------------------
def init_params(key, obs_dim, embedding_dim):
    params = {}
    in_ch = obs_dim[0]
    keys = jax.random.split(key, 2 * len(HIDDEN) + 2)
    k_idx = 0
    c, h, w = obs_dim
    for li, (oc, ks, st) in enumerate(zip(HIDDEN, KSIZE, STRIDE)):
        fan_in = in_ch * ks * ks
        scale = 1.0 / jnp.sqrt(fan_in)
        params[f"conv{li}_w"] = scale * jax.random.normal(
            keys[k_idx], (oc, in_ch, ks, ks), dtype=jnp.float32)
        k_idx += 1
        params[f"conv{li}_b"] = scale * jax.random.normal(
            keys[k_idx], (oc,), dtype=jnp.float32)
        k_idx += 1
        h = (h - ks) // st + 1
        w = (w - ks) // st + 1
        in_ch = oc
    flatten_dim = in_ch * h * w
    scale = 1.0 / jnp.sqrt(flatten_dim)
    params["lin_w"] = scale * jax.random.normal(
        keys[k_idx], (embedding_dim, flatten_dim), dtype=jnp.float32)
    k_idx += 1
    params["lin_b"] = scale * jax.random.normal(
        keys[k_idx], (embedding_dim,), dtype=jnp.float32)
    return params, flatten_dim


def conv_encoder_reference(x, params):
    B = x.shape[0]
    cur = x
    for li, (oc, ks, st) in enumerate(zip(HIDDEN, KSIZE, STRIDE)):
        _, C, H, W = cur.shape
        oh = (H - ks) // st + 1
        ow = (W - ks) // st + 1
        cols = []
        for i in range(ks):
            for j in range(ks):
                cols.append(cur[:, :, i:i + st * oh:st, j:j + st * ow:st])
        cols = jnp.stack(cols, axis=2).reshape(B, C * ks * ks, oh, ow)
        cols = cols.transpose(0, 2, 3, 1).reshape(B * oh * ow, C * ks * ks)
        w = params[f"conv{li}_w"].reshape(oc, -1).T
        out = jnp.maximum(cols @ w + params[f"conv{li}_b"], 0.0)
        cur = out.reshape(B, oh, ow, oc).transpose(0, 3, 1, 2)
    flat = cur.reshape(B, -1)
    return flat @ params["lin_w"].T + params["lin_b"]


if __name__ == "__main__":
    # Smallest spatial size consistent with the conv stack:
    #   36 -> (36-8)/4+1 = 8 -> (8-4)/2+1 = 3 -> (3-3)/1+1 = 1
    obs_dim = (4, 36, 36)
    embedding_dim = 32
    batch = 2

    key = jax.random.PRNGKey(0)
    k_params, k_x = jax.random.split(key)
    params, flatten_dim = init_params(k_params, obs_dim, embedding_dim)
    x = jax.random.normal(k_x, (batch,) + obs_dim, dtype=jnp.float32)

    prepared = prepare_params(params, obs_dim, embedding_dim)   # one-time weight prep

    fwd = jax.jit(conv_encoder_forward)
    out = fwd(x, prepared)
    out = jax.block_until_ready(out)

    assert out.shape == (batch, embedding_dim), out.shape
    assert bool(jnp.all(jnp.isfinite(out)))

    # Loose-tolerance check vs f32 reference (kernel runs the MXU in bf16).
    ref = conv_encoder_reference(x, params)
    tol = 5e-2 * (1.0 + float(jnp.max(jnp.abs(ref))))
    max_err = float(jnp.max(jnp.abs(out - ref)))
    assert max_err < tol, (max_err, tol)

    print("KERNEL_OK")
</pallas_src>

<mosaic_0001>
module attributes {stable_mosaic.version = 11 : i64} {
  func.func @_encoder_kernel(%arg0: i32, %arg1: memref<1x9x9x64xbf16, #tpu.memory_space<vmem>>, %arg2: memref<256x32xbf16, #tpu.memory_space<vmem>>, %arg3: memref<1x32xf32, #tpu.memory_space<vmem>>, %arg4: memref<512x64xbf16, #tpu.memory_space<vmem>>, %arg5: memref<1x64xf32, #tpu.memory_space<vmem>>, %arg6: memref<576x64xbf16, #tpu.memory_space<vmem>>, %arg7: memref<1x64xf32, #tpu.memory_space<vmem>>, %arg8: memref<64x32xbf16, #tpu.memory_space<vmem>>, %arg9: memref<1x32xf32, #tpu.memory_space<vmem>>, %arg10: memref<1x1x32xf32, #tpu.memory_space<vmem>>) attributes {dimension_semantics = [#tpu.dimension_semantics<parallel>], iteration_bounds = array<i64: 2>, scalar_prefetch = 0 : i64, scratch_operands = 0 : i64, tpu.core_type = #tpu.core_type<tc>, window_params = [{transform_indices = @transform_0, window_bounds = array<i64: 1, 9, 9, 64>}, {pipeline_mode = #tpu.pipeline_mode<synchronous>, transform_indices = @transform_1, window_bounds = array<i64: 256, 32>}, {pipeline_mode = #tpu.pipeline_mode<synchronous>, transform_indices = @transform_2, window_bounds = array<i64: 1, 32>}, {pipeline_mode = #tpu.pipeline_mode<synchronous>, transform_indices = @transform_3, window_bounds = array<i64: 512, 64>}, {pipeline_mode = #tpu.pipeline_mode<synchronous>, transform_indices = @transform_4, window_bounds = array<i64: 1, 64>}, {pipeline_mode = #tpu.pipeline_mode<synchronous>, transform_indices = @transform_5, window_bounds = array<i64: 576, 64>}, {pipeline_mode = #tpu.pipeline_mode<synchronous>, transform_indices = @transform_6, window_bounds = array<i64: 1, 64>}, {pipeline_mode = #tpu.pipeline_mode<synchronous>, transform_indices = @transform_7, window_bounds = array<i64: 64, 32>}, {pipeline_mode = #tpu.pipeline_mode<synchronous>, transform_indices = @transform_8, window_bounds = array<i64: 1, 32>}, {transform_indices = @transform_9, window_bounds = array<i64: 1, 1, 32>}]} {
    %c0 = arith.constant 0 : index
    %c0_0 = arith.constant 0 : index
    %c0_1 = arith.constant 0 : index
    %c0_2 = arith.constant 0 : index
    %0 = vector.load %arg1[%c0, %c0_0, %c0_1, %c0_2] : memref<1x9x9x64xbf16, #tpu.memory_space<vmem>>, vector<1x9x9x64xbf16>
    %1 = vector.extract_strided_slice %0 {offsets = [0, 0, 0, 0], sizes = [1, 8, 8, 64], strides = [1, 1, 1, 1]} : vector<1x9x9x64xbf16> to vector<1x8x8x64xbf16>
    %2 = vector.extract_strided_slice %0 {offsets = [0, 0, 1, 0], sizes = [1, 8, 8, 64], strides = [1, 1, 1, 1]} : vector<1x9x9x64xbf16> to vector<1x8x8x64xbf16>
    %3 = vector.extract_strided_slice %0 {offsets = [0, 1, 0, 0], sizes = [1, 8, 8, 64], strides = [1, 1, 1, 1]} : vector<1x9x9x64xbf16> to vector<1x8x8x64xbf16>
    %4 = vector.extract_strided_slice %0 {offsets = [0, 1, 1, 0], sizes = [1, 8, 8, 64], strides = [1, 1, 1, 1]} : vector<1x9x9x64xbf16> to vector<1x8x8x64xbf16>
    %5 = tpu.concatenate %1, %2, %3, %4 in 3 : vector<1x8x8x64xbf16>, vector<1x8x8x64xbf16>, vector<1x8x8x64xbf16>, vector<1x8x8x64xbf16> -> vector<1x8x8x256xbf16>
    %6 = vector.shape_cast %5 : vector<1x8x8x256xbf16> to vector<64x256xbf16>
    %c0_3 = arith.constant 0 : index
    %c0_4 = arith.constant 0 : index
    %7 = vector.load %arg2[%c0_3, %c0_4] : memref<256x32xbf16, #tpu.memory_space<vmem>>, vector<256x32xbf16>
    %cst = arith.constant dense<0.000000e+00> : vector<64x32xf32>
    %8 = tpu.matmul %6, %7, %cst {dimension_numbers = #tpu.dot_dimension_numbers<[1], [0], [0], [1], [0, 0, 1, 1], [], []>} : vector<64x256xbf16>, vector<256x32xbf16>, vector<64x32xf32> -> vector<64x32xf32>
    %c0_5 = arith.constant 0 : index
    %c0_6 = arith.constant 0 : index
    %9 = vector.load %arg3[%c0_5, %c0_6] : memref<1x32xf32, #tpu.memory_space<vmem>>, vector<1x32xf32>
    %10 = vector.broadcast %9 : vector<1x32xf32> to vector<64x32xf32>
    %11 = arith.addf %8, %10 : vector<64x32xf32>
    %cst_7 = arith.constant 0.000000e+00 : f32
    %12 = vector.broadcast %cst_7 : f32 to vector<64x32xf32>
    %13 = arith.maximumf %11, %12 : vector<64x32xf32>
    %14 = arith.truncf %13 : vector<64x32xf32> to vector<64x32xbf16>
    %15 = vector.shape_cast %14 : vector<64x32xbf16> to vector<1x8x8x32xbf16>
    %16 = vector.extract_strided_slice %15 {offsets = [0, 0, 0, 0], sizes = [1, 1, 1, 32], strides = [1, 1, 1, 1]} : vector<1x8x8x32xbf16> to vector<1x1x1x32xbf16>
    %17 = vector.shape_cast %16 : vector<1x1x1x32xbf16> to vector<1x32xbf16>
    %18 = vector.extract_strided_slice %15 {offsets = [0, 0, 1, 0], sizes = [1, 1, 1, 32], strides = [1, 1, 1, 1]} : vector<1x8x8x32xbf16> to vector<1x1x1x32xbf16>
    %19 = vector.shape_cast %18 : vector<1x1x1x32xbf16> to vector<1x32xbf16>
    %20 = vector.extract_strided_slice %15 {offsets = [0, 0, 2, 0], sizes = [1, 1, 1, 32], strides = [1, 1, 1, 1]} : vector<1x8x8x32xbf16> to vector<1x1x1x32xbf16>
    %21 = vector.shape_cast %20 : vector<1x1x1x32xbf16> to vector<1x32xbf16>
    %22 = vector.extract_strided_slice %15 {offsets = [0, 0, 3, 0], sizes = [1, 1, 1, 32], strides = [1, 1, 1, 1]} : vector<1x8x8x32xbf16> to vector<1x1x1x32xbf16>
    %23 = vector.shape_cast %22 : vector<1x1x1x32xbf16> to vector<1x32xbf16>
    %24 = vector.extract_strided_slice %15 {offsets = [0, 1, 0, 0], sizes = [1, 1, 1, 32], strides = [1, 1, 1, 1]} : vector<1x8x8x32xbf16> to vector<1x1x1x32xbf16>
    %25 = vector.shape_cast %24 : vector<1x1x1x32xbf16> to vector<1x32xbf16>
    %26 = vector.extract_strided_slice %15 {offsets = [0, 1, 1, 0], sizes = [1, 1, 1, 32], strides = [1, 1, 1, 1]} : vector<1x8x8x32xbf16> to vector<1x1x1x32xbf16>
    %27 = vector.shape_cast %26 : vector<1x1x1x32xbf16> to vector<1x32xbf16>
    %28 = vector.extract_strided_slice %15 {offsets = [0, 1, 2, 0], sizes = [1, 1, 1, 32], strides = [1, 1, 1, 1]} : vector<1x8x8x32xbf16> to vector<1x1x1x32xbf16>
    %29 = vector.shape_cast %28 : vector<1x1x1x32xbf16> to vector<1x32xbf16>
    %30 = vector.extract_strided_slice %15 {offsets = [0, 1, 3, 0], sizes = [1, 1, 1, 32], strides = [1, 1, 1, 1]} : vector<1x8x8x32xbf16> to vector<1x1x1x32xbf16>
    %31 = vector.shape_cast %30 : vector<1x1x1x32xbf16> to vector<1x32xbf16>
    %32 = vector.extract_strided_slice %15 {offsets = [0, 2, 0, 0], sizes = [1, 1, 1, 32], strides = [1, 1, 1, 1]} : vector<1x8x8x32xbf16> to vector<1x1x1x32xbf16>
    %33 = vector.shape_cast %32 : vector<1x1x1x32xbf16> to vector<1x32xbf16>
    %34 = vector.extract_strided_slice %15 {offsets = [0, 2, 1, 0], sizes = [1, 1, 1, 32], strides = [1, 1, 1, 1]} : vector<1x8x8x32xbf16> to vector<1x1x1x32xbf16>
    %35 = vector.shape_cast %34 : vector<1x1x1x32xbf16> to vector<1x32xbf16>
    %36 = vector.extract_strided_slice %15 {offsets = [0, 2, 2, 0], sizes = [1, 1, 1, 32], strides = [1, 1, 1, 1]} : vector<1x8x8x32xbf16> to vector<1x1x1x32xbf16>
    %37 = vector.shape_cast %36 : vector<1x1x1x32xbf16> to vector<1x32xbf16>
    %38 = vector.extract_strided_slice %15 {offsets = [0, 2, 3, 0], sizes = [1, 1, 1, 32], strides = [1, 1, 1, 1]} : vector<1x8x8x32xbf16> to vector<1x1x1x32xbf16>
    %39 = vector.shape_cast %38 : vector<1x1x1x32xbf16> to vector<1x32xbf16>
    %40 = vector.extract_strided_slice %15 {offsets = [0, 3, 0, 0], sizes = [1, 1, 1, 32], strides = [1, 1, 1, 1]} : vector<1x8x8x32xbf16> to vector<1x1x1x32xbf16>
    %41 = vector.shape_cast %40 : vector<1x1x1x32xbf16> to vector<1x32xbf16>
    %42 = vector.extract_strided_slice %15 {offsets = [0, 3, 1, 0], sizes = [1, 1, 1, 32], strides = [1, 1, 1, 1]} : vector<1x8x8x32xbf16> to vector<1x1x1x32xbf16>
    %43 = vector.shape_cast %42 : vector<1x1x1x32xbf16> to vector<1x32xbf16>
    %44 = vector.extract_strided_slice %15 {offsets = [0, 3, 2, 0], sizes = [1, 1, 1, 32], strides = [1, 1, 1, 1]} : vector<1x8x8x32xbf16> to vector<1x1x1x32xbf16>
    %45 = vector.shape_cast %44 : vector<1x1x1x32xbf16> to vector<1x32xbf16>
    %46 = vector.extract_strided_slice %15 {offsets = [0, 3, 3, 0], sizes = [1, 1, 1, 32], strides = [1, 1, 1, 1]} : vector<1x8x8x32xbf16> to vector<1x1x1x32xbf16>
    %47 = vector.shape_cast %46 : vector<1x1x1x32xbf16> to vector<1x32xbf16>
    %48 = tpu.concatenate %17, %19, %21, %23, %25, %27, %29, %31, %33, %35, %37, %39, %41, %43, %45, %47 in 1 : vector<1x32xbf16>, vector<1x32xbf16>, vector<1x32xbf16>, vector<1x32xbf16>, vector<1x32xbf16>, vector<1x32xbf16>, vector<1x32xbf16>, vector<1x32xbf16>, vector<1x32xbf16>, vector<1x32xbf16>, vector<1x32xbf16>, vector<1x32xbf16>, vector<1x32xbf16>, vector<1x32xbf16>, vector<1x32xbf16>, vector<1x32xbf16> -> vector<1x512xbf16>
    %c0_8 = arith.constant 0 : index
    %c0_9 = arith.constant 0 : index
    %49 = vector.load %arg4[%c0_8, %c0_9] : memref<512x64xbf16, #tpu.memory_space<vmem>>, vector<512x64xbf16>
    %cst_10 = arith.constant dense<0.000000e+00> : vector<1x64xf32>
    %50 = tpu.matmul %48, %49, %cst_10 {dimension_numbers = #tpu.dot_dimension_numbers<[1], [0], [0], [1], [0, 0, 1, 1], [], []>} : vector<1x512xbf16>, vector<512x64xbf16>, vector<1x64xf32> -> vector<1x64xf32>
    %c0_11 = arith.constant 0 : index
    %c0_12 = arith.constant 0 : index
    %51 = vector.load %arg5[%c0_11, %c0_12] : memref<1x64xf32, #tpu.memory_space<vmem>>, vector<1x64xf32>
    %52 = arith.addf %50, %51 : vector<1x64xf32>
    %cst_13 = arith.constant 0.000000e+00 : f32
    %53 = vector.broadcast %cst_13 : f32 to vector<1x64xf32>
    %54 = arith.maximumf %52, %53 : vector<1x64xf32>
    %55 = arith.truncf %54 : vector<1x64xf32> to vector<1x64xbf16>
    %56 = vector.extract_strided_slice %15 {offsets = [0, 0, 2, 0], sizes = [1, 1, 1, 32], strides = [1, 1, 1, 1]} : vector<1x8x8x32xbf16> to vector<1x1x1x32xbf16>
    %57 = vector.shape_cast %56 : vector<1x1x1x32xbf16> to vector<1x32xbf16>
    %58 = vector.extract_strided_slice %15 {offsets = [0, 0, 3, 0], sizes = [1, 1, 1, 32], strides = [1, 1, 1, 1]} : vector<1x8x8x32xbf16> to vector<1x1x1x32xbf16>
    %59 = vector.shape_cast %58 : vector<1x1x1x32xbf16> to vector<1x32xbf16>
    %60 = vector.extract_strided_slice %15 {offsets = [0, 0, 4, 0], sizes = [1, 1, 1, 32], strides = [1, 1, 1, 1]} : vector<1x8x8x32xbf16> to vector<1x1x1x32xbf16>
    %61 = vector.shape_cast %60 : vector<1x1x1x32xbf16> to vector<1x32xbf16>
    %62 = vector.extract_strided_slice %15 {offsets = [0, 0, 5, 0], sizes = [1, 1, 1, 32], strides = [1, 1, 1, 1]} : vector<1x8x8x32xbf16> to vector<1x1x1x32xbf16>
    %63 = vector.shape_cast %62 : vector<1x1x1x32xbf16> to vector<1x32xbf16>
    %64 = vector.extract_strided_slice %15 {offsets = [0, 1, 2, 0], sizes = [1, 1, 1, 32], strides = [1, 1, 1, 1]} : vector<1x8x8x32xbf16> to vector<1x1x1x32xbf16>
    %65 = vector.shape_cast %64 : vector<1x1x1x32xbf16> to vector<1x32xbf16>
    %66 = vector.extract_strided_slice %15 {offsets = [0, 1, 3, 0], sizes = [1, 1, 1, 32], strides = [1, 1, 1, 1]} : vector<1x8x8x32xbf16> to vector<1x1x1x32xbf16>
    %67 = vector.shape_cast %66 : vector<1x1x1x32xbf16> to vector<1x32xbf16>
    %68 = vector.extract_strided_slice %15 {offsets = [0, 1, 4, 0], sizes = [1, 1, 1, 32], strides = [1, 1, 1, 1]} : vector<1x8x8x32xbf16> to vector<1x1x1x32xbf16>
    %69 = vector.shape_cast %68 : vector<1x1x1x32xbf16> to vector<1x32xbf16>
    %70 = vector.extract_strided_slice %15 {offsets = [0, 1, 5, 0], sizes = [1, 1, 1, 32], strides = [1, 1, 1, 1]} : vector<1x8x8x32xbf16> to vector<1x1x1x32xbf16>
    %71 = vector.shape_cast %70 : vector<1x1x1x32xbf16> to vector<1x32xbf16>
    %72 = vector.extract_strided_slice %15 {offsets = [0, 2, 2, 0], sizes = [1, 1, 1, 32], strides = [1, 1, 1, 1]} : vector<1x8x8x32xbf16> to vector<1x1x1x32xbf16>
    %73 = vector.shape_cast %72 : vector<1x1x1x32xbf16> to vector<1x32xbf16>
    %74 = vector.extract_strided_slice %15 {offsets = [0, 2, 3, 0], sizes = [1, 1, 1, 32], strides = [1, 1, 1, 1]} : vector<1x8x8x32xbf16> to vector<1x1x1x32xbf16>
    %75 = vector.shape_cast %74 : vector<1x1x1x32xbf16> to vector<1x32xbf16>
    %76 = vector.extract_strided_slice %15 {offsets = [0, 2, 4, 0], sizes = [1, 1, 1, 32], strides = [1, 1, 1, 1]} : vector<1x8x8x32xbf16> to vector<1x1x1x32xbf16>
    %77 = vector.shape_cast %76 : vector<1x1x1x32xbf16> to vector<1x32xbf16>
    %78 = vector.extract_strided_slice %15 {offsets = [0, 2, 5, 0], sizes = [1, 1, 1, 32], strides = [1, 1, 1, 1]} : vector<1x8x8x32xbf16> to vector<1x1x1x32xbf16>
    %79 = vector.shape_cast %78 : vector<1x1x1x32xbf16> to vector<1x32xbf16>
    %80 = vector.extract_strided_slice %15 {offsets = [0, 3, 2, 0], sizes = [1, 1, 1, 32], strides = [1, 1, 1, 1]} : vector<1x8x8x32xbf16> to vector<1x1x1x32xbf16>
    %81 = vector.shape_cast %80 : vector<1x1x1x32xbf16> to vector<1x32xbf16>
    %82 = vector.extract_strided_slice %15 {offsets = [0, 3, 3, 0], sizes = [1, 1, 1, 32], strides = [1, 1, 1, 1]} : vector<1x8x8x32xbf16> to vector<1x1x1x32xbf16>
    %83 = vector.shape_cast %82 : vector<1x1x1x32xbf16> to vector<1x32xbf16>
    %84 = vector.extract_strided_slice %15 {offsets = [0, 3, 4, 0], sizes = [1, 1, 1, 32], strides = [1, 1, 1, 1]} : vector<1x8x8x32xbf16> to vector<1x1x1x32xbf16>
    %85 = vector.shape_cast %84 : vector<1x1x1x32xbf16> to vector<1x32xbf16>
    %86 = vector.extract_strided_slice %15 {offsets = [0, 3, 5, 0], sizes = [1, 1, 1, 32], strides = [1, 1, 1, 1]} : vector<1x8x8x32xbf16> to vector<1x1x1x32xbf16>
    %87 = vector.shape_cast %86 : vector<1x1x1x32xbf16> to vector<1x32xbf16>
    %88 = tpu.concatenate %57, %59, %61, %63, %65, %67, %69, %71, %73, %75, %77, %79, %81, %83, %85, %87 in 1 : vector<1x32xbf16>, vector<1x32xbf16>, vector<1x32xbf16>, vector<1x32xbf16>, vector<1x32xbf16>, vector<1x32xbf16>, vector<1x32xbf16>, vector<1x32xbf16>, vector<1x32xbf16>, vector<1x32xbf16>, vector<1x32xbf16>, vector<1x32xbf16>, vector<1x32xbf16>, vector<1x32xbf16>, vector<1x32xbf16>, vector<1x32xbf16> -> vector<1x512xbf16>
    %c0_14 = arith.constant 0 : index
    %c0_15 = arith.constant 0 : index
    %89 = vector.load %arg4[%c0_14, %c0_15] : memref<512x64xbf16, #tpu.memory_space<vmem>>, vector<512x64xbf16>
    %cst_16 = arith.constant dense<0.000000e+00> : vector<1x64xf32>
    %90 = tpu.matmul %88, %89, %cst_16 {dimension_numbers = #tpu.dot_dimension_numbers<[1], [0], [0], [1], [0, 0, 1, 1], [], []>} : vector<1x512xbf16>, vector<512x64xbf16>, vector<1x64xf32> -> vector<1x64xf32>
    %c0_17 = arith.constant 0 : index
    %c0_18 = arith.constant 0 : index
    %91 = vector.load %arg5[%c0_17, %c0_18] : memref<1x64xf32, #tpu.memory_space<vmem>>, vector<1x64xf32>
    %92 = arith.addf %90, %91 : vector<1x64xf32>
    %cst_19 = arith.constant 0.000000e+00 : f32
    %93 = vector.broadcast %cst_19 : f32 to vector<1x64xf32>
    %94 = arith.maximumf %92, %93 : vector<1x64xf32>
    %95 = arith.truncf %94 : vector<1x64xf32> to vector<1x64xbf16>
    %96 = vector.extract_strided_slice %15 {offsets = [0, 0, 4, 0], sizes = [1, 1, 1, 32], strides = [1, 1, 1, 1]} : vector<1x8x8x32xbf16> to vector<1x1x1x32xbf16>
    %97 = vector.shape_cast %96 : vector<1x1x1x32xbf16> to vector<1x32xbf16>
    %98 = vector.extract_strided_slice %15 {offsets = [0, 0, 5, 0], sizes = [1, 1, 1, 32], strides = [1, 1, 1, 1]} : vector<1x8x8x32xbf16> to vector<1x1x1x32xbf16>
    %99 = vector.shape_cast %98 : vector<1x1x1x32xbf16> to vector<1x32xbf16>
    %100 = vector.extract_strided_slice %15 {offsets = [0, 0, 6, 0], sizes = [1, 1, 1, 32], strides = [1, 1, 1, 1]} : vector<1x8x8x32xbf16> to vector<1x1x1x32xbf16>
    %101 = vector.shape_cast %100 : vector<1x1x1x32xbf16> to vector<1x32xbf16>
    %102 = vector.extract_strided_slice %15 {offsets = [0, 0, 7, 0], sizes = [1, 1, 1, 32], strides = [1, 1, 1, 1]} : vector<1x8x8x32xbf16> to vector<1x1x1x32xbf16>
    %103 = vector.shape_cast %102 : vector<1x1x1x32xbf16> to vector<1x32xbf16>
    %104 = vector.extract_strided_slice %15 {offsets = [0, 1, 4, 0], sizes = [1, 1, 1, 32], strides = [1, 1, 1, 1]} : vector<1x8x8x32xbf16> to vector<1x1x1x32xbf16>
    %105 = vector.shape_cast %104 : vector<1x1x1x32xbf16> to vector<1x32xbf16>
    %106 = vector.extract_strided_slice %15 {offsets = [0, 1, 5, 0], sizes = [1, 1, 1, 32], strides = [1, 1, 1, 1]} : vector<1x8x8x32xbf16> to vector<1x1x1x32xbf16>
    %107 = vector.shape_cast %106 : vector<1x1x1x32xbf16> to vector<1x32xbf16>
    %108 = vector.extract_strided_slice %15 {offsets = [0, 1, 6, 0], sizes = [1, 1, 1, 32], strides = [1, 1, 1, 1]} : vector<1x8x8x32xbf16> to vector<1x1x1x32xbf16>
    %109 = vector.shape_cast %108 : vector<1x1x1x32xbf16> to vector<1x32xbf16>
    %110 = vector.extract_strided_slice %15 {offsets = [0, 1, 7, 0], sizes = [1, 1, 1, 32], strides = [1, 1, 1, 1]} : vector<1x8x8x32xbf16> to vector<1x1x1x32xbf16>
    %111 = vector.shape_cast %110 : vector<1x1x1x32xbf16> to vector<1x32xbf16>
    %112 = vector.extract_strided_slice %15 {offsets = [0, 2, 4, 0], sizes = [1, 1, 1, 32], strides = [1, 1, 1, 1]} : vector<1x8x8x32xbf16> to vector<1x1x1x32xbf16>
    %113 = vector.shape_cast %112 : vector<1x1x1x32xbf16> to vector<1x32xbf16>
    %114 = vector.extract_strided_slice %15 {offsets = [0, 2, 5, 0], sizes = [1, 1, 1, 32], strides = [1, 1, 1, 1]} : vector<1x8x8x32xbf16> to vector<1x1x1x32xbf16>
    %115 = vector.shape_cast %114 : vector<1x1x1x32xbf16> to vector<1x32xbf16>
    %116 = vector.extract_strided_slice %15 {offsets = [0, 2, 6, 0], sizes = [1, 1, 1, 32], strides = [1, 1, 1, 1]} : vector<1x8x8x32xbf16> to vector<1x1x1x32xbf16>
    %117 = vector.shape_cast %116 : vector<1x1x1x32xbf16> to vector<1x32xbf16>
    %118 = vector.extract_strided_slice %15 {offsets = [0, 2, 7, 0], sizes = [1, 1, 1, 32], strides = [1, 1, 1, 1]} : vector<1x8x8x32xbf16> to vector<1x1x1x32xbf16>
    %119 = vector.shape_cast %118 : vector<1x1x1x32xbf16> to vector<1x32xbf16>
    %120 = vector.extract_strided_slice %15 {offsets = [0, 3, 4, 0], sizes = [1, 1, 1, 32], strides = [1, 1, 1, 1]} : vector<1x8x8x32xbf16> to vector<1x1x1x32xbf16>
    %121 = vector.shape_cast %120 : vector<1x1x1x32xbf16> to vector<1x32xbf16>
    %122 = vector.extract_strided_slice %15 {offsets = [0, 3, 5, 0], sizes = [1, 1, 1, 32], strides = [1, 1, 1, 1]} : vector<1x8x8x32xbf16> to vector<1x1x1x32xbf16>
    %123 = vector.shape_cast %122 : vector<1x1x1x32xbf16> to vector<1x32xbf16>
    %124 = vector.extract_strided_slice %15 {offsets = [0, 3, 6, 0], sizes = [1, 1, 1, 32], strides = [1, 1, 1, 1]} : vector<1x8x8x32xbf16> to vector<1x1x1x32xbf16>
    %125 = vector.shape_cast %124 : vector<1x1x1x32xbf16> to vector<1x32xbf16>
    %126 = vector.extract_strided_slice %15 {offsets = [0, 3, 7, 0], sizes = [1, 1, 1, 32], strides = [1, 1, 1, 1]} : vector<1x8x8x32xbf16> to vector<1x1x1x32xbf16>
    %127 = vector.shape_cast %126 : vector<1x1x1x32xbf16> to vector<1x32xbf16>
    %128 = tpu.concatenate %97, %99, %101, %103, %105, %107, %109, %111, %113, %115, %117, %119, %121, %123, %125, %127 in 1 : vector<1x32xbf16>, vector<1x32xbf16>, vector<1x32xbf16>, vector<1x32xbf16>, vector<1x32xbf16>, vector<1x32xbf16>, vector<1x32xbf16>, vector<1x32xbf16>, vector<1x32xbf16>, vector<1x32xbf16>, vector<1x32xbf16>, vector<1x32xbf16>, vector<1x32xbf16>, vector<1x32xbf16>, vector<1x32xbf16>, vector<1x32xbf16> -> vector<1x512xbf16>
    %c0_20 = arith.constant 0 : index
    %c0_21 = arith.constant 0 : index
    %129 = vector.load %arg4[%c0_20, %c0_21] : memref<512x64xbf16, #tpu.memory_space<vmem>>, vector<512x64xbf16>
    %cst_22 = arith.constant dense<0.000000e+00> : vector<1x64xf32>
    %130 = tpu.matmul %128, %129, %cst_22 {dimension_numbers = #tpu.dot_dimension_numbers<[1], [0], [0], [1], [0, 0, 1, 1], [], []>} : vector<1x512xbf16>, vector<512x64xbf16>, vector<1x64xf32> -> vector<1x64xf32>
    %c0_23 = arith.constant 0 : index
    %c0_24 = arith.constant 0 : index
    %131 = vector.load %arg5[%c0_23, %c0_24] : memref<1x64xf32, #tpu.memory_space<vmem>>, vector<1x64xf32>
    %132 = arith.addf %130, %131 : vector<1x64xf32>
    %cst_25 = arith.constant 0.000000e+00 : f32
    %133 = vector.broadcast %cst_25 : f32 to vector<1x64xf32>
    %134 = arith.maximumf %132, %133 : vector<1x64xf32>
    %135 = arith.truncf %134 : vector<1x64xf32> to vector<1x64xbf16>
    %136 = vector.extract_strided_slice %15 {offsets = [0, 2, 0, 0], sizes = [1, 1, 1, 32], strides = [1, 1, 1, 1]} : vector<1x8x8x32xbf16> to vector<1x1x1x32xbf16>
    %137 = vector.shape_cast %136 : vector<1x1x1x32xbf16> to vector<1x32xbf16>
    %138 = vector.extract_strided_slice %15 {offsets = [0, 2, 1, 0], sizes = [1, 1, 1, 32], strides = [1, 1, 1, 1]} : vector<1x8x8x32xbf16> to vector<1x1x1x32xbf16>
    %139 = vector.shape_cast %138 : vector<1x1x1x32xbf16> to vector<1x32xbf16>
    %140 = vector.extract_strided_slice %15 {offsets = [0, 2, 2, 0], sizes = [1, 1, 1, 32], strides = [1, 1, 1, 1]} : vector<1x8x8x32xbf16> to vector<1x1x1x32xbf16>
    %141 = vector.shape_cast %140 : vector<1x1x1x32xbf16> to vector<1x32xbf16>
    %142 = vector.extract_strided_slice %15 {offsets = [0, 2, 3, 0], sizes = [1, 1, 1, 32], strides = [1, 1, 1, 1]} : vector<1x8x8x32xbf16> to vector<1x1x1x32xbf16>
    %143 = vector.shape_cast %142 : vector<1x1x1x32xbf16> to vector<1x32xbf16>
    %144 = vector.extract_strided_slice %15 {offsets = [0, 3, 0, 0], sizes = [1, 1, 1, 32], strides = [1, 1, 1, 1]} : vector<1x8x8x32xbf16> to vector<1x1x1x32xbf16>
    %145 = vector.shape_cast %144 : vector<1x1x1x32xbf16> to vector<1x32xbf16>
    %146 = vector.extract_strided_slice %15 {offsets = [0, 3, 1, 0], sizes = [1, 1, 1, 32], strides = [1, 1, 1, 1]} : vector<1x8x8x32xbf16> to vector<1x1x1x32xbf16>
    %147 = vector.shape_cast %146 : vector<1x1x1x32xbf16> to vector<1x32xbf16>
    %148 = vector.extract_strided_slice %15 {offsets = [0, 3, 2, 0], sizes = [1, 1, 1, 32], strides = [1, 1, 1, 1]} : vector<1x8x8x32xbf16> to vector<1x1x1x32xbf16>
    %149 = vector.shape_cast %148 : vector<1x1x1x32xbf16> to vector<1x32xbf16>
    %150 = vector.extract_strided_slice %15 {offsets = [0, 3, 3, 0], sizes = [1, 1, 1, 32], strides = [1, 1, 1, 1]} : vector<1x8x8x32xbf16> to vector<1x1x1x32xbf16>
    %151 = vector.shape_cast %150 : vector<1x1x1x32xbf16> to vector<1x32xbf16>
    %152 = vector.extract_strided_slice %15 {offsets = [0, 4, 0, 0], sizes = [1, 1, 1, 32], strides = [1, 1, 1, 1]} : vector<1x8x8x32xbf16> to vector<1x1x1x32xbf16>
    %153 = vector.shape_cast %152 : vector<1x1x1x32xbf16> to vector<1x32xbf16>
    %154 = vector.extract_strided_slice %15 {offsets = [0, 4, 1, 0], sizes = [1, 1, 1, 32], strides = [1, 1, 1, 1]} : vector<1x8x8x32xbf16> to vector<1x1x1x32xbf16>
    %155 = vector.shape_cast %154 : vector<1x1x1x32xbf16> to vector<1x32xbf16>
    %156 = vector.extract_strided_slice %15 {offsets = [0, 4, 2, 0], sizes = [1, 1, 1, 32], strides = [1, 1, 1, 1]} : vector<1x8x8x32xbf16> to vector<1x1x1x32xbf16>
    %157 = vector.shape_cast %156 : vector<1x1x1x32xbf16> to vector<1x32xbf16>
    %158 = vector.extract_strided_slice %15 {offsets = [0, 4, 3, 0], sizes = [1, 1, 1, 32], strides = [1, 1, 1, 1]} : vector<1x8x8x32xbf16> to vector<1x1x1x32xbf16>
    %159 = vector.shape_cast %158 : vector<1x1x1x32xbf16> to vector<1x32xbf16>
    %160 = vector.extract_strided_slice %15 {offsets = [0, 5, 0, 0], sizes = [1, 1, 1, 32], strides = [1, 1, 1, 1]} : vector<1x8x8x32xbf16> to vector<1x1x1x32xbf16>
    %161 = vector.shape_cast %160 : vector<1x1x1x32xbf16> to vector<1x32xbf16>
    %162 = vector.extract_strided_slice %15 {offsets = [0, 5, 1, 0], sizes = [1, 1, 1, 32], strides = [1, 1, 1, 1]} : vector<1x8x8x32xbf16> to vector<1x1x1x32xbf16>
    %163 = vector.shape_cast %162 : vector<1x1x1x32xbf16> to vector<1x32xbf16>
    %164 = vector.extract_strided_slice %15 {offsets = [0, 5, 2, 0], sizes = [1, 1, 1, 32], strides = [1, 1, 1, 1]} : vector<1x8x8x32xbf16> to vector<1x1x1x32xbf16>
    %165 = vector.shape_cast %164 : vector<1x1x1x32xbf16> to vector<1x32xbf16>
    %166 = vector.extract_strided_slice %15 {offsets = [0, 5, 3, 0], sizes = [1, 1, 1, 32], strides = [1, 1, 1, 1]} : vector<1x8x8x32xbf16> to vector<1x1x1x32xbf16>
    %167 = vector.shape_cast %166 : vector<1x1x1x32xbf16> to vector<1x32xbf16>
    %168 = tpu.concatenate %137, %139, %141, %143, %145, %147, %149, %151, %153, %155, %157, %159, %161, %163, %165, %167 in 1 : vector<1x32xbf16>, vector<1x32xbf16>, vector<1x32xbf16>, vector<1x32xbf16>, vector<1x32xbf16>, vector<1x32xbf16>, vector<1x32xbf16>, vector<1x32xbf16>, vector<1x32xbf16>, vector<1x32xbf16>, vector<1x32xbf16>, vector<1x32xbf16>, vector<1x32xbf16>, vector<1x32xbf16>, vector<1x32xbf16>, vector<1x32xbf16> -> vector<1x512xbf16>
    %c0_26 = arith.constant 0 : index
    %c0_27 = arith.constant 0 : index
    %169 = vector.load %arg4[%c0_26, %c0_27] : memref<512x64xbf16, #tpu.memory_space<vmem>>, vector<512x64xbf16>
    %cst_28 = arith.constant dense<0.000000e+00> : vector<1x64xf32>
    %170 = tpu.matmul %168, %169, %cst_28 {dimension_numbers = #tpu.dot_dimension_numbers<[1], [0], [0], [1], [0, 0, 1, 1], [], []>} : vector<1x512xbf16>, vector<512x64xbf16>, vector<1x64xf32> -> vector<1x64xf32>
    %c0_29 = arith.constant 0 : index
    %c0_30 = arith.constant 0 : index
    %171 = vector.load %arg5[%c0_29, %c0_30] : memref<1x64xf32, #tpu.memory_space<vmem>>, vector<1x64xf32>
    %172 = arith.addf %170, %171 : vector<1x64xf32>
    %cst_31 = arith.constant 0.000000e+00 : f32
    %173 = vector.broadcast %cst_31 : f32 to vector<1x64xf32>
    %174 = arith.maximumf %172, %173 : vector<1x64xf32>
    %175 = arith.truncf %174 : vector<1x64xf32> to vector<1x64xbf16>
    %176 = vector.extract_strided_slice %15 {offsets = [0, 2, 2, 0], sizes = [1, 1, 1, 32], strides = [1, 1, 1, 1]} : vector<1x8x8x32xbf16> to vector<1x1x1x32xbf16>
    %177 = vector.shape_cast %176 : vector<1x1x1x32xbf16> to vector<1x32xbf16>
    %178 = vector.extract_strided_slice %15 {offsets = [0, 2, 3, 0], sizes = [1, 1, 1, 32], strides = [1, 1, 1, 1]} : vector<1x8x8x32xbf16> to vector<1x1x1x32xbf16>
    %179 = vector.shape_cast %178 : vector<1x1x1x32xbf16> to vector<1x32xbf16>
    %180 = vector.extract_strided_slice %15 {offsets = [0, 2, 4, 0], sizes = [1, 1, 1, 32], strides = [1, 1, 1, 1]} : vector<1x8x8x32xbf16> to vector<1x1x1x32xbf16>
    %181 = vector.shape_cast %180 : vector<1x1x1x32xbf16> to vector<1x32xbf16>
    %182 = vector.extract_strided_slice %15 {offsets = [0, 2, 5, 0], sizes = [1, 1, 1, 32], strides = [1, 1, 1, 1]} : vector<1x8x8x32xbf16> to vector<1x1x1x32xbf16>
    %183 = vector.shape_cast %182 : vector<1x1x1x32xbf16> to vector<1x32xbf16>
    %184 = vector.extract_strided_slice %15 {offsets = [0, 3, 2, 0], sizes = [1, 1, 1, 32], strides = [1, 1, 1, 1]} : vector<1x8x8x32xbf16> to vector<1x1x1x32xbf16>
    %185 = vector.shape_cast %184 : vector<1x1x1x32xbf16> to vector<1x32xbf16>
    %186 = vector.extract_strided_slice %15 {offsets = [0, 3, 3, 0], sizes = [1, 1, 1, 32], strides = [1, 1, 1, 1]} : vector<1x8x8x32xbf16> to vector<1x1x1x32xbf16>
    %187 = vector.shape_cast %186 : vector<1x1x1x32xbf16> to vector<1x32xbf16>
    %188 = vector.extract_strided_slice %15 {offsets = [0, 3, 4, 0], sizes = [1, 1, 1, 32], strides = [1, 1, 1, 1]} : vector<1x8x8x32xbf16> to vector<1x1x1x32xbf16>
    %189 = vector.shape_cast %188 : vector<1x1x1x32xbf16> to vector<1x32xbf16>
    %190 = vector.extract_strided_slice %15 {offsets = [0, 3, 5, 0], sizes = [1, 1, 1, 32], strides = [1, 1, 1, 1]} : vector<1x8x8x32xbf16> to vector<1x1x1x32xbf16>
    %191 = vector.shape_cast %190 : vector<1x1x1x32xbf16> to vector<1x32xbf16>
    %192 = vector.extract_strided_slice %15 {offsets = [0, 4, 2, 0], sizes = [1, 1, 1, 32], strides = [1, 1, 1, 1]} : vector<1x8x8x32xbf16> to vector<1x1x1x32xbf16>
    %193 = vector.shape_cast %192 : vector<1x1x1x32xbf16> to vector<1x32xbf16>
    %194 = vector.extract_strided_slice %15 {offsets = [0, 4, 3, 0], sizes = [1, 1, 1, 32], strides = [1, 1, 1, 1]} : vector<1x8x8x32xbf16> to vector<1x1x1x32xbf16>
    %195 = vector.shape_cast %194 : vector<1x1x1x32xbf16> to vector<1x32xbf16>
    %196 = vector.extract_strided_slice %15 {offsets = [0, 4, 4, 0], sizes = [1, 1, 1, 32], strides = [1, 1, 1, 1]} : vector<1x8x8x32xbf16> to vector<1x1x1x32xbf16>
    %197 = vector.shape_cast %196 : vector<1x1x1x32xbf16> to vector<1x32xbf16>
    %198 = vector.extract_strided_slice %15 {offsets = [0, 4, 5, 0], sizes = [1, 1, 1, 32], strides = [1, 1, 1, 1]} : vector<1x8x8x32xbf16> to vector<1x1x1x32xbf16>
    %199 = vector.shape_cast %198 : vector<1x1x1x32xbf16> to vector<1x32xbf16>
    %200 = vector.extract_strided_slice %15 {offsets = [0, 5, 2, 0], sizes = [1, 1, 1, 32], strides = [1, 1, 1, 1]} : vector<1x8x8x32xbf16> to vector<1x1x1x32xbf16>
    %201 = vector.shape_cast %200 : vector<1x1x1x32xbf16> to vector<1x32xbf16>
    %202 = vector.extract_strided_slice %15 {offsets = [0, 5, 3, 0], sizes = [1, 1, 1, 32], strides = [1, 1, 1, 1]} : vector<1x8x8x32xbf16> to vector<1x1x1x32xbf16>
    %203 = vector.shape_cast %202 : vector<1x1x1x32xbf16> to vector<1x32xbf16>
    %204 = vector.extract_strided_slice %15 {offsets = [0, 5, 4, 0], sizes = [1, 1, 1, 32], strides = [1, 1, 1, 1]} : vector<1x8x8x32xbf16> to vector<1x1x1x32xbf16>
    %205 = vector.shape_cast %204 : vector<1x1x1x32xbf16> to vector<1x32xbf16>
    %206 = vector.extract_strided_slice %15 {offsets = [0, 5, 5, 0], sizes = [1, 1, 1, 32], strides = [1, 1, 1, 1]} : vector<1x8x8x32xbf16> to vector<1x1x1x32xbf16>
    %207 = vector.shape_cast %206 : vector<1x1x1x32xbf16> to vector<1x32xbf16>
    %208 = tpu.concatenate %177, %179, %181, %183, %185, %187, %189, %191, %193, %195, %197, %199, %201, %203, %205, %207 in 1 : vector<1x32xbf16>, vector<1x32xbf16>, vector<1x32xbf16>, vector<1x32xbf16>, vector<1x32xbf16>, vector<1x32xbf16>, vector<1x32xbf16>, vector<1x32xbf16>, vector<1x32xbf16>, vector<1x32xbf16>, vector<1x32xbf16>, vector<1x32xbf16>, vector<1x32xbf16>, vector<1x32xbf16>, vector<1x32xbf16>, vector<1x32xbf16> -> vector<1x512xbf16>
    %c0_32 = arith.constant 0 : index
    %c0_33 = arith.constant 0 : index
    %209 = vector.load %arg4[%c0_32, %c0_33] : memref<512x64xbf16, #tpu.memory_space<vmem>>, vector<512x64xbf16>
    %cst_34 = arith.constant dense<0.000000e+00> : vector<1x64xf32>
    %210 = tpu.matmul %208, %209, %cst_34 {dimension_numbers = #tpu.dot_dimension_numbers<[1], [0], [0], [1], [0, 0, 1, 1], [], []>} : vector<1x512xbf16>, vector<512x64xbf16>, vector<1x64xf32> -> vector<1x64xf32>
    %c0_35 = arith.constant 0 : index
    %c0_36 = arith.constant 0 : index
    %211 = vector.load %arg5[%c0_35, %c0_36] : memref<1x64xf32, #tpu.memory_space<vmem>>, vector<1x64xf32>
    %212 = arith.addf %210, %211 : vector<1x64xf32>
    %cst_37 = arith.constant 0.000000e+00 : f32
    %213 = vector.broadcast %cst_37 : f32 to vector<1x64xf32>
    %214 = arith.maximumf %212, %213 : vector<1x64xf32>
    %215 = arith.truncf %214 : vector<1x64xf32> to vector<1x64xbf16>
    %216 = vector.extract_strided_slice %15 {offsets = [0, 2, 4, 0], sizes = [1, 1, 1, 32], strides = [1, 1, 1, 1]} : vector<1x8x8x32xbf16> to vector<1x1x1x32xbf16>
    %217 = vector.shape_cast %216 : vector<1x1x1x32xbf16> to vector<1x32xbf16>
    %218 = vector.extract_strided_slice %15 {offsets = [0, 2, 5, 0], sizes = [1, 1, 1, 32], strides = [1, 1, 1, 1]} : vector<1x8x8x32xbf16> to vector<1x1x1x32xbf16>
    %219 = vector.shape_cast %218 : vector<1x1x1x32xbf16> to vector<1x32xbf16>
    %220 = vector.extract_strided_slice %15 {offsets = [0, 2, 6, 0], sizes = [1, 1, 1, 32], strides = [1, 1, 1, 1]} : vector<1x8x8x32xbf16> to vector<1x1x1x32xbf16>
    %221 = vector.shape_cast %220 : vector<1x1x1x32xbf16> to vector<1x32xbf16>
    %222 = vector.extract_strided_slice %15 {offsets = [0, 2, 7, 0], sizes = [1, 1, 1, 32], strides = [1, 1, 1, 1]} : vector<1x8x8x32xbf16> to vector<1x1x1x32xbf16>
    %223 = vector.shape_cast %222 : vector<1x1x1x32xbf16> to vector<1x32xbf16>
    %224 = vector.extract_strided_slice %15 {offsets = [0, 3, 4, 0], sizes = [1, 1, 1, 32], strides = [1, 1, 1, 1]} : vector<1x8x8x32xbf16> to vector<1x1x1x32xbf16>
    %225 = vector.shape_cast %224 : vector<1x1x1x32xbf16> to vector<1x32xbf16>
    %226 = vector.extract_strided_slice %15 {offsets = [0, 3, 5, 0], sizes = [1, 1, 1, 32], strides = [1, 1, 1, 1]} : vector<1x8x8x32xbf16> to vector<1x1x1x32xbf16>
    %227 = vector.shape_cast %226 : vector<1x1x1x32xbf16> to vector<1x32xbf16>
    %228 = vector.extract_strided_slice %15 {offsets = [0, 3, 6, 0], sizes = [1, 1, 1, 32], strides = [1, 1, 1, 1]} : vector<1x8x8x32xbf16> to vector<1x1x1x32xbf16>
    %229 = vector.shape_cast %228 : vector<1x1x1x32xbf16> to vector<1x32xbf16>
    %230 = vector.extract_strided_slice %15 {offsets = [0, 3, 7, 0], sizes = [1, 1, 1, 32], strides = [1, 1, 1, 1]} : vector<1x8x8x32xbf16> to vector<1x1x1x32xbf16>
    %231 = vector.shape_cast %230 : vector<1x1x1x32xbf16> to vector<1x32xbf16>
    %232 = vector.extract_strided_slice %15 {offsets = [0, 4, 4, 0], sizes = [1, 1, 1, 32], strides = [1, 1, 1, 1]} : vector<1x8x8x32xbf16> to vector<1x1x1x32xbf16>
    %233 = vector.shape_cast %232 : vector<1x1x1x32xbf16> to vector<1x32xbf16>
    %234 = vector.extract_strided_slice %15 {offsets = [0, 4, 5, 0], sizes = [1, 1, 1, 32], strides = [1, 1, 1, 1]} : vector<1x8x8x32xbf16> to vector<1x1x1x32xbf16>
    %235 = vector.shape_cast %234 : vector<1x1x1x32xbf16> to vector<1x32xbf16>
    %236 = vector.extract_strided_slice %15 {offsets = [0, 4, 6, 0], sizes = [1, 1, 1, 32], strides = [1, 1, 1, 1]} : vector<1x8x8x32xbf16> to vector<1x1x1x32xbf16>
    %237 = vector.shape_cast %236 : vector<1x1x1x32xbf16> to vector<1x32xbf16>
    %238 = vector.extract_strided_slice %15 {offsets = [0, 4, 7, 0], sizes = [1, 1, 1, 32], strides = [1, 1, 1, 1]} : vector<1x8x8x32xbf16> to vector<1x1x1x32xbf16>
    %239 = vector.shape_cast %238 : vector<1x1x1x32xbf16> to vector<1x32xbf16>
    %240 = vector.extract_strided_slice %15 {offsets = [0, 5, 4, 0], sizes = [1, 1, 1, 32], strides = [1, 1, 1, 1]} : vector<1x8x8x32xbf16> to vector<1x1x1x32xbf16>
    %241 = vector.shape_cast %240 : vector<1x1x1x32xbf16> to vector<1x32xbf16>
    %242 = vector.extract_strided_slice %15 {offsets = [0, 5, 5, 0], sizes = [1, 1, 1, 32], strides = [1, 1, 1, 1]} : vector<1x8x8x32xbf16> to vector<1x1x1x32xbf16>
    %243 = vector.shape_cast %242 : vector<1x1x1x32xbf16> to vector<1x32xbf16>
    %244 = vector.extract_strided_slice %15 {offsets = [0, 5, 6, 0], sizes = [1, 1, 1, 32], strides = [1, 1, 1, 1]} : vector<1x8x8x32xbf16> to vector<1x1x1x32xbf16>
    %245 = vector.shape_cast %244 : vector<1x1x1x32xbf16> to vector<1x32xbf16>
    %246 = vector.extract_strided_slice %15 {offsets = [0, 5, 7, 0], sizes = [1, 1, 1, 32], strides = [1, 1, 1, 1]} : vector<1x8x8x32xbf16> to vector<1x1x1x32xbf16>
    %247 = vector.shape_cast %246 : vector<1x1x1x32xbf16> to vector<1x32xbf16>
    %248 = tpu.concatenate %217, %219, %221, %223, %225, %227, %229, %231, %233, %235, %237, %239, %241, %243, %245, %247 in 1 : vector<1x32xbf16>, vector<1x32xbf16>, vector<1x32xbf16>, vector<1x32xbf16>, vector<1x32xbf16>, vector<1x32xbf16>, vector<1x32xbf16>, vector<1x32xbf16>, vector<1x32xbf16>, vector<1x32xbf16>, vector<1x32xbf16>, vector<1x32xbf16>, vector<1x32xbf16>, vector<1x32xbf16>, vector<1x32xbf16>, vector<1x32xbf16> -> vector<1x512xbf16>
    %c0_38 = arith.constant 0 : index
    %c0_39 = arith.constant 0 : index
    %249 = vector.load %arg4[%c0_38, %c0_39] : memref<512x64xbf16, #tpu.memory_space<vmem>>, vector<512x64xbf16>
    %cst_40 = arith.constant dense<0.000000e+00> : vector<1x64xf32>
    %250 = tpu.matmul %248, %249, %cst_40 {dimension_numbers = #tpu.dot_dimension_numbers<[1], [0], [0], [1], [0, 0, 1, 1], [], []>} : vector<1x512xbf16>, vector<512x64xbf16>, vector<1x64xf32> -> vector<1x64xf32>
    %c0_41 = arith.constant 0 : index
    %c0_42 = arith.constant 0 : index
    %251 = vector.load %arg5[%c0_41, %c0_42] : memref<1x64xf32, #tpu.memory_space<vmem>>, vector<1x64xf32>
    %252 = arith.addf %250, %251 : vector<1x64xf32>
    %cst_43 = arith.constant 0.000000e+00 : f32
    %253 = vector.broadcast %cst_43 : f32 to vector<1x64xf32>
    %254 = arith.maximumf %252, %253 : vector<1x64xf32>
    %255 = arith.truncf %254 : vector<1x64xf32> to vector<1x64xbf16>
    %256 = vector.extract_strided_slice %15 {offsets = [0, 4, 0, 0], sizes = [1, 1, 1, 32], strides = [1, 1, 1, 1]} : vector<1x8x8x32xbf16> to vector<1x1x1x32xbf16>
    %257 = vector.shape_cast %256 : vector<1x1x1x32xbf16> to vector<1x32xbf16>
    %258 = vector.extract_strided_slice %15 {offsets = [0, 4, 1, 0], sizes = [1, 1, 1, 32], strides = [1, 1, 1, 1]} : vector<1x8x8x32xbf16> to vector<1x1x1x32xbf16>
    %259 = vector.shape_cast %258 : vector<1x1x1x32xbf16> to vector<1x32xbf16>
    %260 = vector.extract_strided_slice %15 {offsets = [0, 4, 2, 0], sizes = [1, 1, 1, 32], strides = [1, 1, 1, 1]} : vector<1x8x8x32xbf16> to vector<1x1x1x32xbf16>
    %261 = vector.shape_cast %260 : vector<1x1x1x32xbf16> to vector<1x32xbf16>
    %262 = vector.extract_strided_slice %15 {offsets = [0, 4, 3, 0], sizes = [1, 1, 1, 32], strides = [1, 1, 1, 1]} : vector<1x8x8x32xbf16> to vector<1x1x1x32xbf16>
    %263 = vector.shape_cast %262 : vector<1x1x1x32xbf16> to vector<1x32xbf16>
    %264 = vector.extract_strided_slice %15 {offsets = [0, 5, 0, 0], sizes = [1, 1, 1, 32], strides = [1, 1, 1, 1]} : vector<1x8x8x32xbf16> to vector<1x1x1x32xbf16>
    %265 = vector.shape_cast %264 : vector<1x1x1x32xbf16> to vector<1x32xbf16>
    %266 = vector.extract_strided_slice %15 {offsets = [0, 5, 1, 0], sizes = [1, 1, 1, 32], strides = [1, 1, 1, 1]} : vector<1x8x8x32xbf16> to vector<1x1x1x32xbf16>
    %267 = vector.shape_cast %266 : vector<1x1x1x32xbf16> to vector<1x32xbf16>
    %268 = vector.extract_strided_slice %15 {offsets = [0, 5, 2, 0], sizes = [1, 1, 1, 32], strides = [1, 1, 1, 1]} : vector<1x8x8x32xbf16> to vector<1x1x1x32xbf16>
    %269 = vector.shape_cast %268 : vector<1x1x1x32xbf16> to vector<1x32xbf16>
    %270 = vector.extract_strided_slice %15 {offsets = [0, 5, 3, 0], sizes = [1, 1, 1, 32], strides = [1, 1, 1, 1]} : vector<1x8x8x32xbf16> to vector<1x1x1x32xbf16>
    %271 = vector.shape_cast %270 : vector<1x1x1x32xbf16> to vector<1x32xbf16>
    %272 = vector.extract_strided_slice %15 {offsets = [0, 6, 0, 0], sizes = [1, 1, 1, 32], strides = [1, 1, 1, 1]} : vector<1x8x8x32xbf16> to vector<1x1x1x32xbf16>
    %273 = vector.shape_cast %272 : vector<1x1x1x32xbf16> to vector<1x32xbf16>
    %274 = vector.extract_strided_slice %15 {offsets = [0, 6, 1, 0], sizes = [1, 1, 1, 32], strides = [1, 1, 1, 1]} : vector<1x8x8x32xbf16> to vector<1x1x1x32xbf16>
    %275 = vector.shape_cast %274 : vector<1x1x1x32xbf16> to vector<1x32xbf16>
    %276 = vector.extract_strided_slice %15 {offsets = [0, 6, 2, 0], sizes = [1, 1, 1, 32], strides = [1, 1, 1, 1]} : vector<1x8x8x32xbf16> to vector<1x1x1x32xbf16>
    %277 = vector.shape_cast %276 : vector<1x1x1x32xbf16> to vector<1x32xbf16>
    %278 = vector.extract_strided_slice %15 {offsets = [0, 6, 3, 0], sizes = [1, 1, 1, 32], strides = [1, 1, 1, 1]} : vector<1x8x8x32xbf16> to vector<1x1x1x32xbf16>
    %279 = vector.shape_cast %278 : vector<1x1x1x32xbf16> to vector<1x32xbf16>
    %280 = vector.extract_strided_slice %15 {offsets = [0, 7, 0, 0], sizes = [1, 1, 1, 32], strides = [1, 1, 1, 1]} : vector<1x8x8x32xbf16> to vector<1x1x1x32xbf16>
    %281 = vector.shape_cast %280 : vector<1x1x1x32xbf16> to vector<1x32xbf16>
    %282 = vector.extract_strided_slice %15 {offsets = [0, 7, 1, 0], sizes = [1, 1, 1, 32], strides = [1, 1, 1, 1]} : vector<1x8x8x32xbf16> to vector<1x1x1x32xbf16>
    %283 = vector.shape_cast %282 : vector<1x1x1x32xbf16> to vector<1x32xbf16>
    %284 = vector.extract_strided_slice %15 {offsets = [0, 7, 2, 0], sizes = [1, 1, 1, 32], strides = [1, 1, 1, 1]} : vector<1x8x8x32xbf16> to vector<1x1x1x32xbf16>
    %285 = vector.shape_cast %284 : vector<1x1x1x32xbf16> to vector<1x32xbf16>
    %286 = vector.extract_strided_slice %15 {offsets = [0, 7, 3, 0], sizes = [1, 1, 1, 32], strides = [1, 1, 1, 1]} : vector<1x8x8x32xbf16> to vector<1x1x1x32xbf16>
    %287 = vector.shape_cast %286 : vector<1x1x1x32xbf16> to vector<1x32xbf16>
    %288 = tpu.concatenate %257, %259, %261, %263, %265, %267, %269, %271, %273, %275, %277, %279, %281, %283, %285, %287 in 1 : vector<1x32xbf16>, vector<1x32xbf16>, vector<1x32xbf16>, vector<1x32xbf16>, vector<1x32xbf16>, vector<1x32xbf16>, vector<1x32xbf16>, vector<1x32xbf16>, vector<1x32xbf16>, vector<1x32xbf16>, vector<1x32xbf16>, vector<1x32xbf16>, vector<1x32xbf16>, vector<1x32xbf16>, vector<1x32xbf16>, vector<1x32xbf16> -> vector<1x512xbf16>
    %c0_44 = arith.constant 0 : index
    %c0_45 = arith.constant 0 : index
    %289 = vector.load %arg4[%c0_44, %c0_45] : memref<512x64xbf16, #tpu.memory_space<vmem>>, vector<512x64xbf16>
    %cst_46 = arith.constant dense<0.000000e+00> : vector<1x64xf32>
    %290 = tpu.matmul %288, %289, %cst_46 {dimension_numbers = #tpu.dot_dimension_numbers<[1], [0], [0], [1], [0, 0, 1, 1], [], []>} : vector<1x512xbf16>, vector<512x64xbf16>, vector<1x64xf32> -> vector<1x64xf32>
    %c0_47 = arith.constant 0 : index
    %c0_48 = arith.constant 0 : index
    %291 = vector.load %arg5[%c0_47, %c0_48] : memref<1x64xf32, #tpu.memory_space<vmem>>, vector<1x64xf32>
    %292 = arith.addf %290, %291 : vector<1x64xf32>
    %cst_49 = arith.constant 0.000000e+00 : f32
    %293 = vector.broadcast %cst_49 : f32 to vector<1x64xf32>
    %294 = arith.maximumf %292, %293 : vector<1x64xf32>
    %295 = arith.truncf %294 : vector<1x64xf32> to vector<1x64xbf16>
    %296 = vector.extract_strided_slice %15 {offsets = [0, 4, 2, 0], sizes = [1, 1, 1, 32], strides = [1, 1, 1, 1]} : vector<1x8x8x32xbf16> to vector<1x1x1x32xbf16>
    %297 = vector.shape_cast %296 : vector<1x1x1x32xbf16> to vector<1x32xbf16>
    %298 = vector.extract_strided_slice %15 {offsets = [0, 4, 3, 0], sizes = [1, 1, 1, 32], strides = [1, 1, 1, 1]} : vector<1x8x8x32xbf16> to vector<1x1x1x32xbf16>
    %299 = vector.shape_cast %298 : vector<1x1x1x32xbf16> to vector<1x32xbf16>
    %300 = vector.extract_strided_slice %15 {offsets = [0, 4, 4, 0], sizes = [1, 1, 1, 32], strides = [1, 1, 1, 1]} : vector<1x8x8x32xbf16> to vector<1x1x1x32xbf16>
    %301 = vector.shape_cast %300 : vector<1x1x1x32xbf16> to vector<1x32xbf16>
    %302 = vector.extract_strided_slice %15 {offsets = [0, 4, 5, 0], sizes = [1, 1, 1, 32], strides = [1, 1, 1, 1]} : vector<1x8x8x32xbf16> to vector<1x1x1x32xbf16>
    %303 = vector.shape_cast %302 : vector<1x1x1x32xbf16> to vector<1x32xbf16>
    %304 = vector.extract_strided_slice %15 {offsets = [0, 5, 2, 0], sizes = [1, 1, 1, 32], strides = [1, 1, 1, 1]} : vector<1x8x8x32xbf16> to vector<1x1x1x32xbf16>
    %305 = vector.shape_cast %304 : vector<1x1x1x32xbf16> to vector<1x32xbf16>
    %306 = vector.extract_strided_slice %15 {offsets = [0, 5, 3, 0], sizes = [1, 1, 1, 32], strides = [1, 1, 1, 1]} : vector<1x8x8x32xbf16> to vector<1x1x1x32xbf16>
    %307 = vector.shape_cast %306 : vector<1x1x1x32xbf16> to vector<1x32xbf16>
    %308 = vector.extract_strided_slice %15 {offsets = [0, 5, 4, 0], sizes = [1, 1, 1, 32], strides = [1, 1, 1, 1]} : vector<1x8x8x32xbf16> to vector<1x1x1x32xbf16>
    %309 = vector.shape_cast %308 : vector<1x1x1x32xbf16> to vector<1x32xbf16>
    %310 = vector.extract_strided_slice %15 {offsets = [0, 5, 5, 0], sizes = [1, 1, 1, 32], strides = [1, 1, 1, 1]} : vector<1x8x8x32xbf16> to vector<1x1x1x32xbf16>
    %311 = vector.shape_cast %310 : vector<1x1x1x32xbf16> to vector<1x32xbf16>
    %312 = vector.extract_strided_slice %15 {offsets = [0, 6, 2, 0], sizes = [1, 1, 1, 32], strides = [1, 1, 1, 1]} : vector<1x8x8x32xbf16> to vector<1x1x1x32xbf16>
    %313 = vector.shape_cast %312 : vector<1x1x1x32xbf16> to vector<1x32xbf16>
    %314 = vector.extract_strided_slice %15 {offsets = [0, 6, 3, 0], sizes = [1, 1, 1, 32], strides = [1, 1, 1, 1]} : vector<1x8x8x32xbf16> to vector<1x1x1x32xbf16>
    %315 = vector.shape_cast %314 : vector<1x1x1x32xbf16> to vector<1x32xbf16>
    %316 = vector.extract_strided_slice %15 {offsets = [0, 6, 4, 0], sizes = [1, 1, 1, 32], strides = [1, 1, 1, 1]} : vector<1x8x8x32xbf16> to vector<1x1x1x32xbf16>
    %317 = vector.shape_cast %316 : vector<1x1x1x32xbf16> to vector<1x32xbf16>
    %318 = vector.extract_strided_slice %15 {offsets = [0, 6, 5, 0], sizes = [1, 1, 1, 32], strides = [1, 1, 1, 1]} : vector<1x8x8x32xbf16> to vector<1x1x1x32xbf16>
    %319 = vector.shape_cast %318 : vector<1x1x1x32xbf16> to vector<1x32xbf16>
    %320 = vector.extract_strided_slice %15 {offsets = [0, 7, 2, 0], sizes = [1, 1, 1, 32], strides = [1, 1, 1, 1]} : vector<1x8x8x32xbf16> to vector<1x1x1x32xbf16>
    %321 = vector.shape_cast %320 : vector<1x1x1x32xbf16> to vector<1x32xbf16>
    %322 = vector.extract_strided_slice %15 {offsets = [0, 7, 3, 0], sizes = [1, 1, 1, 32], strides = [1, 1, 1, 1]} : vector<1x8x8x32xbf16> to vector<1x1x1x32xbf16>
    %323 = vector.shape_cast %322 : vector<1x1x1x32xbf16> to vector<1x32xbf16>
    %324 = vector.extract_strided_slice %15 {offsets = [0, 7, 4, 0], sizes = [1, 1, 1, 32], strides = [1, 1, 1, 1]} : vector<1x8x8x32xbf16> to vector<1x1x1x32xbf16>
    %325 = vector.shape_cast %324 : vector<1x1x1x32xbf16> to vector<1x32xbf16>
    %326 = vector.extract_strided_slice %15 {offsets = [0, 7, 5, 0], sizes = [1, 1, 1, 32], strides = [1, 1, 1, 1]} : vector<1x8x8x32xbf16> to vector<1x1x1x32xbf16>
    %327 = vector.shape_cast %326 : vector<1x1x1x32xbf16> to vector<1x32xbf16>
    %328 = tpu.concatenate %297, %299, %301, %303, %305, %307, %309, %311, %313, %315, %317, %319, %321, %323, %325, %327 in 1 : vector<1x32xbf16>, vector<1x32xbf16>, vector<1x32xbf16>, vector<1x32xbf16>, vector<1x32xbf16>, vector<1x32xbf16>, vector<1x32xbf16>, vector<1x32xbf16>, vector<1x32xbf16>, vector<1x32xbf16>, vector<1x32xbf16>, vector<1x32xbf16>, vector<1x32xbf16>, vector<1x32xbf16>, vector<1x32xbf16>, vector<1x32xbf16> -> vector<1x512xbf16>
    %c0_50 = arith.constant 0 : index
    %c0_51 = arith.constant 0 : index
    %329 = vector.load %arg4[%c0_50, %c0_51] : memref<512x64xbf16, #tpu.memory_space<vmem>>, vector<512x64xbf16>
    %cst_52 = arith.constant dense<0.000000e+00> : vector<1x64xf32>
    %330 = tpu.matmul %328, %329, %cst_52 {dimension_numbers = #tpu.dot_dimension_numbers<[1], [0], [0], [1], [0, 0, 1, 1], [], []>} : vector<1x512xbf16>, vector<512x64xbf16>, vector<1x64xf32> -> vector<1x64xf32>
    %c0_53 = arith.constant 0 : index
    %c0_54 = arith.constant 0 : index
    %331 = vector.load %arg5[%c0_53, %c0_54] : memref<1x64xf32, #tpu.memory_space<vmem>>, vector<1x64xf32>
    %332 = arith.addf %330, %331 : vector<1x64xf32>
    %cst_55 = arith.constant 0.000000e+00 : f32
    %333 = vector.broadcast %cst_55 : f32 to vector<1x64xf32>
    %334 = arith.maximumf %332, %333 : vector<1x64xf32>
    %335 = arith.truncf %334 : vector<1x64xf32> to vector<1x64xbf16>
    %336 = vector.extract_strided_slice %15 {offsets = [0, 4, 4, 0], sizes = [1, 1, 1, 32], strides = [1, 1, 1, 1]} : vector<1x8x8x32xbf16> to vector<1x1x1x32xbf16>
    %337 = vector.shape_cast %336 : vector<1x1x1x32xbf16> to vector<1x32xbf16>
    %338 = vector.extract_strided_slice %15 {offsets = [0, 4, 5, 0], sizes = [1, 1, 1, 32], strides = [1, 1, 1, 1]} : vector<1x8x8x32xbf16> to vector<1x1x1x32xbf16>
    %339 = vector.shape_cast %338 : vector<1x1x1x32xbf16> to vector<1x32xbf16>
    %340 = vector.extract_strided_slice %15 {offsets = [0, 4, 6, 0], sizes = [1, 1, 1, 32], strides = [1, 1, 1, 1]} : vector<1x8x8x32xbf16> to vector<1x1x1x32xbf16>
    %341 = vector.shape_cast %340 : vector<1x1x1x32xbf16> to vector<1x32xbf16>
    %342 = vector.extract_strided_slice %15 {offsets = [0, 4, 7, 0], sizes = [1, 1, 1, 32], strides = [1, 1, 1, 1]} : vector<1x8x8x32xbf16> to vector<1x1x1x32xbf16>
    %343 = vector.shape_cast %342 : vector<1x1x1x32xbf16> to vector<1x32xbf16>
    %344 = vector.extract_strided_slice %15 {offsets = [0, 5, 4, 0], sizes = [1, 1, 1, 32], strides = [1, 1, 1, 1]} : vector<1x8x8x32xbf16> to vector<1x1x1x32xbf16>
    %345 = vector.shape_cast %344 : vector<1x1x1x32xbf16> to vector<1x32xbf16>
    %346 = vector.extract_strided_slice %15 {offsets = [0, 5, 5, 0], sizes = [1, 1, 1, 32], strides = [1, 1, 1, 1]} : vector<1x8x8x32xbf16> to vector<1x1x1x32xbf16>
    %347 = vector.shape_cast %346 : vector<1x1x1x32xbf16> to vector<1x32xbf16>
    %348 = vector.extract_strided_slice %15 {offsets = [0, 5, 6, 0], sizes = [1, 1, 1, 32], strides = [1, 1, 1, 1]} : vector<1x8x8x32xbf16> to vector<1x1x1x32xbf16>
    %349 = vector.shape_cast %348 : vector<1x1x1x32xbf16> to vector<1x32xbf16>
    %350 = vector.extract_strided_slice %15 {offsets = [0, 5, 7, 0], sizes = [1, 1, 1, 32], strides = [1, 1, 1, 1]} : vector<1x8x8x32xbf16> to vector<1x1x1x32xbf16>
    %351 = vector.shape_cast %350 : vector<1x1x1x32xbf16> to vector<1x32xbf16>
    %352 = vector.extract_strided_slice %15 {offsets = [0, 6, 4, 0], sizes = [1, 1, 1, 32], strides = [1, 1, 1, 1]} : vector<1x8x8x32xbf16> to vector<1x1x1x32xbf16>
    %353 = vector.shape_cast %352 : vector<1x1x1x32xbf16> to vector<1x32xbf16>
    %354 = vector.extract_strided_slice %15 {offsets = [0, 6, 5, 0], sizes = [1, 1, 1, 32], strides = [1, 1, 1, 1]} : vector<1x8x8x32xbf16> to vector<1x1x1x32xbf16>
    %355 = vector.shape_cast %354 : vector<1x1x1x32xbf16> to vector<1x32xbf16>
    %356 = vector.extract_strided_slice %15 {offsets = [0, 6, 6, 0], sizes = [1, 1, 1, 32], strides = [1, 1, 1, 1]} : vector<1x8x8x32xbf16> to vector<1x1x1x32xbf16>
    %357 = vector.shape_cast %356 : vector<1x1x1x32xbf16> to vector<1x32xbf16>
    %358 = vector.extract_strided_slice %15 {offsets = [0, 6, 7, 0], sizes = [1, 1, 1, 32], strides = [1, 1, 1, 1]} : vector<1x8x8x32xbf16> to vector<1x1x1x32xbf16>
    %359 = vector.shape_cast %358 : vector<1x1x1x32xbf16> to vector<1x32xbf16>
    %360 = vector.extract_strided_slice %15 {offsets = [0, 7, 4, 0], sizes = [1, 1, 1, 32], strides = [1, 1, 1, 1]} : vector<1x8x8x32xbf16> to vector<1x1x1x32xbf16>
    %361 = vector.shape_cast %360 : vector<1x1x1x32xbf16> to vector<1x32xbf16>
    %362 = vector.extract_strided_slice %15 {offsets = [0, 7, 5, 0], sizes = [1, 1, 1, 32], strides = [1, 1, 1, 1]} : vector<1x8x8x32xbf16> to vector<1x1x1x32xbf16>
    %363 = vector.shape_cast %362 : vector<1x1x1x32xbf16> to vector<1x32xbf16>
    %364 = vector.extract_strided_slice %15 {offsets = [0, 7, 6, 0], sizes = [1, 1, 1, 32], strides = [1, 1, 1, 1]} : vector<1x8x8x32xbf16> to vector<1x1x1x32xbf16>
    %365 = vector.shape_cast %364 : vector<1x1x1x32xbf16> to vector<1x32xbf16>
    %366 = vector.extract_strided_slice %15 {offsets = [0, 7, 7, 0], sizes = [1, 1, 1, 32], strides = [1, 1, 1, 1]} : vector<1x8x8x32xbf16> to vector<1x1x1x32xbf16>
    %367 = vector.shape_cast %366 : vector<1x1x1x32xbf16> to vector<1x32xbf16>
    %368 = tpu.concatenate %337, %339, %341, %343, %345, %347, %349, %351, %353, %355, %357, %359, %361, %363, %365, %367 in 1 : vector<1x32xbf16>, vector<1x32xbf16>, vector<1x32xbf16>, vector<1x32xbf16>, vector<1x32xbf16>, vector<1x32xbf16>, vector<1x32xbf16>, vector<1x32xbf16>, vector<1x32xbf16>, vector<1x32xbf16>, vector<1x32xbf16>, vector<1x32xbf16>, vector<1x32xbf16>, vector<1x32xbf16>, vector<1x32xbf16>, vector<1x32xbf16> -> vector<1x512xbf16>
    %c0_56 = arith.constant 0 : index
    %c0_57 = arith.constant 0 : index
    %369 = vector.load %arg4[%c0_56, %c0_57] : memref<512x64xbf16, #tpu.memory_space<vmem>>, vector<512x64xbf16>
    %cst_58 = arith.constant dense<0.000000e+00> : vector<1x64xf32>
    %370 = tpu.matmul %368, %369, %cst_58 {dimension_numbers = #tpu.dot_dimension_numbers<[1], [0], [0], [1], [0, 0, 1, 1], [], []>} : vector<1x512xbf16>, vector<512x64xbf16>, vector<1x64xf32> -> vector<1x64xf32>
    %c0_59 = arith.constant 0 : index
    %c0_60 = arith.constant 0 : index
    %371 = vector.load %arg5[%c0_59, %c0_60] : memref<1x64xf32, #tpu.memory_space<vmem>>, vector<1x64xf32>
    %372 = arith.addf %370, %371 : vector<1x64xf32>
    %cst_61 = arith.constant 0.000000e+00 : f32
    %373 = vector.broadcast %cst_61 : f32 to vector<1x64xf32>
    %374 = arith.maximumf %372, %373 : vector<1x64xf32>
    %375 = arith.truncf %374 : vector<1x64xf32> to vector<1x64xbf16>
    %cst_62 = arith.constant 0.000000e+00 : f32
    %376 = vector.broadcast %cst_62 : f32 to vector<1x32xf32>
    %c0_63 = arith.constant 0 : index
    %c0_64 = arith.constant 0 : index
    %377 = vector.load %arg9[%c0_63, %c0_64] : memref<1x32xf32, #tpu.memory_space<vmem>>, vector<1x32xf32>
    %378 = arith.addf %376, %377 : vector<1x32xf32>
    %379 = tpu.concatenate %55, %95, %135, %175, %215, %255, %295, %335, %375 in 1 : vector<1x64xbf16>, vector<1x64xbf16>, vector<1x64xbf16>, vector<1x64xbf16>, vector<1x64xbf16>, vector<1x64xbf16>, vector<1x64xbf16>, vector<1x64xbf16>, vector<1x64xbf16> -> vector<1x576xbf16>
    %c0_65 = arith.constant 0 : index
    %c0_66 = arith.constant 0 : index
    %380 = vector.load %arg6[%c0_65, %c0_66] : memref<576x64xbf16, #tpu.memory_space<vmem>>, vector<576x64xbf16>
    %cst_67 = arith.constant dense<0.000000e+00> : vector<1x64xf32>
    %381 = tpu.matmul %379, %380, %cst_67 {dimension_numbers = #tpu.dot_dimension_numbers<[1], [0], [0], [1], [0, 0, 1, 1], [], []>} : vector<1x576xbf16>, vector<576x64xbf16>, vector<1x64xf32> -> vector<1x64xf32>
    %c0_68 = arith.constant 0 : index
    %c0_69 = arith.constant 0 : index
    %382 = vector.load %arg7[%c0_68, %c0_69] : memref<1x64xf32, #tpu.memory_space<vmem>>, vector<1x64xf32>
    %383 = arith.addf %381, %382 : vector<1x64xf32>
    %cst_70 = arith.constant 0.000000e+00 : f32
    %384 = vector.broadcast %cst_70 : f32 to vector<1x64xf32>
    %385 = arith.maximumf %383, %384 : vector<1x64xf32>
    %386 = arith.truncf %385 : vector<1x64xf32> to vector<1x64xbf16>
    %c0_71 = arith.constant 0 : index
    %c0_72 = arith.constant 0 : index
    %387 = vector.load %arg8[%c0_71, %c0_72] : memref<64x32xbf16, #tpu.memory_space<vmem>>, vector<64x32xbf16>
    %cst_73 = arith.constant dense<0.000000e+00> : vector<1x32xf32>
    %388 = tpu.matmul %386, %387, %cst_73 {dimension_numbers = #tpu.dot_dimension_numbers<[1], [0], [0], [1], [0, 0, 1, 1], [], []>} : vector<1x64xbf16>, vector<64x32xbf16>, vector<1x32xf32> -> vector<1x32xf32>
    %389 = arith.addf %378, %388 : vector<1x32xf32>
    %c0_74 = arith.constant 0 : index
    %c0_75 = arith.constant 0 : index
    %c0_76 = arith.constant 0 : index
    %390 = vector.load %arg10[%c0_74, %c0_75, %c0_76] : memref<1x1x32xf32, #tpu.memory_space<vmem>>, vector<1x1x32xf32>
    %391 = vector.shape_cast %390 : vector<1x1x32xf32> to vector<1x32xf32>
    %392 = vector.shape_cast %389 : vector<1x32xf32> to vector<1x1x32xf32>
    tpu.vector_store %arg10[%c0_74, %c0_75, %c0_76], %392 {strides = array<i32>} : memref<1x1x32xf32, #tpu.memory_space<vmem>>, vector<1x1x32xf32>,
    return
  }
  func.func @transform_0(%arg0: i32) -> (i32, i32, i32, i32) {
    %c0_i32 = arith.constant 0 : i32
    %c0_i32_0 = arith.constant 0 : i32
    %c0_i32_1 = arith.constant 0 : i32
    %c0_i32_2 = arith.constant 0 : i32
    return %arg0, %c0_i32, %c0_i32_0, %c0_i32_1 : i32, i32, i32, i32
  }
  func.func @transform_1(%arg0: i32) -> (i32, i32) {
    %c0_i32 = arith.constant 0 : i32
    %c0_i32_0 = arith.constant 0 : i32
    %c0_i32_1 = arith.constant 0 : i32
    return %c0_i32, %c0_i32_0 : i32, i32
  }
  func.func @transform_2(%arg0: i32) -> (i32, i32) {
    %c0_i32 = arith.constant 0 : i32
    %c0_i32_0 = arith.constant 0 : i32
    %c0_i32_1 = arith.constant 0 : i32
    return %c0_i32, %c0_i32_0 : i32, i32
  }
  func.func @transform_3(%arg0: i32) -> (i32, i32) {
    %c0_i32 = arith.constant 0 : i32
    %c0_i32_0 = arith.constant 0 : i32
    %c0_i32_1 = arith.constant 0 : i32
    return %c0_i32, %c0_i32_0 : i32, i32
  }
  func.func @transform_4(%arg0: i32) -> (i32, i32) {
    %c0_i32 = arith.constant 0 : i32
    %c0_i32_0 = arith.constant 0 : i32
    %c0_i32_1 = arith.constant 0 : i32
    return %c0_i32, %c0_i32_0 : i32, i32
  }
  func.func @transform_5(%arg0: i32) -> (i32, i32) {
    %c0_i32 = arith.constant 0 : i32
    %c0_i32_0 = arith.constant 0 : i32
    %c0_i32_1 = arith.constant 0 : i32
    return %c0_i32, %c0_i32_0 : i32, i32
  }
  func.func @transform_6(%arg0: i32) -> (i32, i32) {
    %c0_i32 = arith.constant 0 : i32
    %c0_i32_0 = arith.constant 0 : i32
    %c0_i32_1 = arith.constant 0 : i32
    return %c0_i32, %c0_i32_0 : i32, i32
  }
  func.func @transform_7(%arg0: i32) -> (i32, i32) {
    %c0_i32 = arith.constant 0 : i32
    %c0_i32_0 = arith.constant 0 : i32
    %c0_i32_1 = arith.constant 0 : i32
    return %c0_i32, %c0_i32_0 : i32, i32
  }
  func.func @transform_8(%arg0: i32) -> (i32, i32) {
    %c0_i32 = arith.constant 0 : i32
    %c0_i32_0 = arith.constant 0 : i32
    %c0_i32_1 = arith.constant 0 : i32
    return %c0_i32, %c0_i32_0 : i32, i32
  }
  func.func @transform_9(%arg0: i32) -> (i32, i32, i32) {
    %c0_i32 = arith.constant 0 : i32
    %c0_i32_0 = arith.constant 0 : i32
    %c0_i32_1 = arith.constant 0 : i32
    return %arg0, %c0_i32, %c0_i32_0 : i32, i32, i32
  }
}

</mosaic_0001>

<bundles_post_ra>
// kernel: conv_encoder_forward.1
= control target key start
LH: loop header
LB: loop body
LE: loop exit
PB: predicated region body
PF: predicated region fallthrough
CT: control target
= control target key end

     0   :  { %14 = vsyncpa [#allocation3], 0  ;;  %s3822_s0 = inlined_call_operand.vmem [shape: bf16[2,9,9,64], index: 0, kind: input, shape index: {}]   ;;  %s3823_s1 = inlined_call_operand.vmem [shape: bf16[256,32], index: 1, kind: input, shape index: {}]   ;;  %s3824_s2 = inlined_call_operand.vmem [shape: f32[1,32], index: 2, kind: input, shape index: {}]   ;;  %s3825_s3 = inlined_call_operand.vmem [shape: bf16[512,64], index: 3, kind: input, shape index: {}]   ;;  %s3826_s4 = inlined_call_operand.vmem [shape: f32[1,64], index: 4, kind: input, shape index: {}]   ;;  %s3827_s5 = inlined_call_operand.vmem [shape: bf16[576,64], index: 5, kind: input, shape index: {}]   ;;  %s3828_s6 = inlined_call_operand.vmem [shape: f32[1,64], index: 6, kind: input, shape index: {}]   ;;  %s3829_s7 = inlined_call_operand.vmem [shape: bf16[64,32], index: 7, kind: input, shape index: {}]   ;;  %s3830_s8 = inlined_call_operand.vmem [shape: f32[1,32], index: 8, kind: input, shape index: {}]   ;;  %s3831_s9 = inlined_call_operand.hbm [shape: f32[2,1,32], index: 9, kind: output, shape index: {}]  }
   0x1   :  { %16 = vsyncpa [#allocation3 + $0x1], 0  ;;  %s2875_s30 = smov 0   ;;  %s2877_s10 = smov 0  }
   0x2   :  { %s2879_s11 = smov 0   ;;  %s2881_s12 = smov 0  }
   0x3 LB: > { %s2896_s13 = sadd.s32 4294967295, %s2820_s12   ;;  %s2220_s14 = sadd.s32 4294967294, %s2820_s12   ;;  %s2820_s12 = sphi %s2881_s12, %s3837_s12   ;;  %s2816_s11 = sphi %s2879_s11, %s3836_s11   ;;  %s2812_s10 = sphi %s2877_s10, %s3835_s10   ;;  %s2808_s30 = sphi %s2875_s30, %s3834_s30  }
   0x4   : > { %s2900_s15 = sadd.s32 1, %s2820_s12   ;;  %s223_s16 = sadd.s32 1, %s2816_s11 }
   0x5   : > { %s220_s17 = ssub.s32 %s2820_s12, %s2900_s15  ;;  %p233_p0 = scmp.ne.s32.totalorder %s2816_s11, %s2812_s10 }
   0x6   : > { %p221_p1 = scmp.eq.s32.totalorder %s220_s17, 0  ;;  %p234_p2 = scmp.eq.s32.totalorder %s2896_s13, 1 }
   0x7   : > { %p239_p3 = scmp.ne.s32.totalorder %s2812_s10, %s2808_s30  ;;  %p240_p4 = scmp.eq.s32.totalorder %s2220_s14, 1 }
   0x8   : > { %s2911_s18 = scalar_select %p221_p1, %s2816_s11, %s223_s16  }
   0x9   : > { %p2913_p5 = por %p234_p2, %p233_p0  ;;  %p2917_p6 = por %p240_p4, %p239_p3 }
   0xa   : > { %p2223_p7 = scmp.ge.s32.totalorder %s2820_s12, 1  ;;  %p290_p8 = scmp.lt.s32.totalorder %s2820_s12, 3 }
   0xc   : > { %p291_p9 = pnand %p2223_p7, %p290_p8 }
   0xd   : > { %p325_p10 = scmp.lt.s32.totalorder (!%p291_p9), %s2896_s13, 1  ;;  %s2822_s16 = smov (!%p291_p9), 64  }
   0xe   : > { %294 = sbr.rel (%p291_p9) target bundleno = 1159 (0x487), region = 56  ;;  %s2824_s28 = smov (!%p291_p9), 96  }
   0xf   : > { %s323_s27 = sand.u32 (!%p291_p9), 1, %s2812_s10   ;;  %s2778_s17 = scalar_lea.hbm (!%p291_p9), %s3831_s9, 2 }
  0x10   : > { %s2153_s24 = scalar_lea.sflag (!%p291_p9), [#allocation3], %s323_s27 }
  0x13   : > { %s326_s21 = scalar_select %p325_p10, %s2896_s13, 1  ;;  %v2633_v0 = vld [vmem:[%s3823_s1 + $0x38] sm:$0xff]  ;;  %v2632_v2 = vld [vmem:[%s3823_s1 + $0x30] sm:$0xff]  ;;  %v2631_v22 = vld [vmem:[%s3823_s1 + $0x28] sm:$0xff]  ;;  %vm475_vm0 = vcmask 523264   ;;  %vm799_vm1 = vcmask 261120  }
  0x14   : > { %v2641_v1 = vld [vmem:[%s3823_s1 + $0x78] sm:$0xff]  ;;  %v2640_v3 = vld [vmem:[%s3823_s1 + $0x70] sm:$0xff]  ;;  %669 = vmatpush.bf16.msra.mxu0 %v2633_v0  ;;  %v2639_v23 = vld [vmem:[%s3823_s1 + $0x68] sm:$0xff]  ;;  %vm805_vm2 = vcmask 785408   ;;  %vm2150_vm3 = vcmask 253952  }
  0x15   : > { %s2714_s22 = smul.u32 72, %s326_s21  ;;  %698 = vmatpush.bf16.msra.mxu1 %v2641_v1  ;;  %v2630_v41 = vld [vmem:[%s3823_s1 + $0x20] sm:$0xff]  ;;  %v2629_v53 = vld [vmem:[%s3823_s1 + $0x18] sm:$0xff] }
  0x16   : > { %v2638_v42 = vld [vmem:[%s3823_s1 + $0x60] sm:$0xff]  ;;  %v2637_v54 = vld [vmem:[%s3823_s1 + $0x58] sm:$0xff] }
  0x17   : > { %s2934_s29 = scalar_lea.vmem %s3822_s0, %s2714_s22 }
  0x18   : > { %v2227_v4 = vld [vmem:[%s2934_s29] sm:$0xf]  ;;  %v2617_v5 = vld [vmem:[%s2934_s29] sm:$0x10]  ;;  %v2235_v6 = vld [vmem:[%s2934_s29 + $0x10] sm:$0xf]  ;;  %670 = vmatpush.bf16.msra.mxu0 %v2632_v2 }
  0x19   : > { %v2228_v7 = vor.u32 %v2617_v5, %v2227_v4  ;;  %v2619_v8 = vld [vmem:[%s2934_s29 + $0x10] sm:$0x10]  ;;  %v2231_v9 = vld [vmem:[%s2934_s29 + $0x8] sm:$0xf]  ;;  %v2618_v10 = vld [vmem:[%s2934_s29 + $0x8] sm:$0x10]  ;;  %699 = vmatpush.bf16.msra.mxu1 %v2640_v3 }
  0x1a   : > { %v2236_v11 = vor.u32 %v2619_v8, %v2235_v6  ;;  %v2232_v12 = vor.u32 %v2618_v10, %v2231_v9  ;;  %v2239_v13 = vld [vmem:[%s2934_s29 + $0x18] sm:$0xf]  ;;  %v2620_v14 = vld [vmem:[%s2934_s29 + $0x18] sm:$0x10]  ;;  %v2243_v18 = vld [vmem:[%s2934_s29 + $0x20] sm:$0xf] }
  0x1b   : > { %v390_v15 = vshrl.u32 %v2228_v7, 16  ;;  %v392_v16 = vshll.u32 %v2228_v7, 16  ;;  %v2240_v17 = vor.u32 %v2620_v14, %v2239_v13  ;;  %v2621_v21 = vld [vmem:[%s2934_s29 + $0x20] sm:$0x10]  ;;  %v2251_v27 = vld [vmem:[%s2934_s29 + $0x30] sm:$0xf] }
  0x1c   : > { %v404_v19 = vshrl.u32 %v2236_v11, 16  ;;  %v406_v20 = vshll.u32 %v2236_v11, 16  ;;  %v399_v25 = vshll.u32 %v2232_v12, 16  ;;  %v397_v29 = vshrl.u32 %v2232_v12, 16  ;;  %v2623_v30 = vld [vmem:[%s2934_s29 + $0x30] sm:$0x10]  ;;  %671 = vmatpush.bf16.msra.mxu0 %v2631_v22 }
  0x1d   : > { %v394_v24 = vrot.slane %v392_v16, 1  ;;  %v413_v26 = vshll.u32 %v2240_v17, 16  ;;  %v2244_v31 = vor.u32 %v2621_v21, %v2243_v18  ;;  %v2247_v32 = vld [vmem:[%s2934_s29 + $0x28] sm:$0xf]  ;;  %v2255_v34 = vld [vmem:[%s2934_s29 + $0x38] sm:$0xf]  ;;  %700 = vmatpush.bf16.msra.mxu1 %v2639_v23  ;;  %v2252_v45 = vor.u32 %v2623_v30, %v2251_v27 }
  0x1e   : > { %v408_v28 = vrot.slane %v406_v20, 1  ;;  %v2624_v35 = vld [vmem:[%s2934_s29 + $0x38] sm:$0x10]  ;;  %v2622_v36 = vld [vmem:[%s2934_s29 + $0x28] sm:$0x10]  ;;  %v411_v38 = vshrl.u32 %v2240_v17, 16 }
  0x1f   : > { %v395_v33 = vor.u32 %v394_v24, %v390_v15  ;;  %v418_v39 = vshrl.u32 %v2244_v31, 16  ;;  %v420_v40 = vshll.u32 %v2244_v31, 16  ;;  %v401_v43 = vrot.slane %v399_v25, 1  ;;  %v2259_v49 = vld [vmem:[%s2934_s29 + $0x40] sm:$0xf]  ;;  %v2628_v9 = vld [vmem:[%s3823_s1 + $0x10] sm:$0xff] }
  0x20   : > { %v409_v37 = vor.u32 %v408_v28, %v404_v19  ;;  %v415_v44 = vrot.slane %v413_v26, 1  ;;  %v2248_v46 = vor.u32 %v2622_v36, %v2247_v32  ;;  %v2256_v48 = vor.u32 %v2624_v35, %v2255_v34  ;;  %v2625_v50 = vld [vmem:[%s2934_s29 + $0x40] sm:$0x10]  ;;  %672 = vmatpush.bf16.msra.mxu0 %v2630_v41  ;;  %v2636_v10 = vld [vmem:[%s3823_s1 + $0x50] sm:$0xff]  ;;  %v2627_v11 = vld [vmem:[%s3823_s1 + $0x8] sm:$0xff] }
  0x21   : > { %445 = vrot.lane.b32.xlu0 %v395_v33, %s2822_s16  ;;  %v422_v47 = vrot.slane %v420_v40, 1  ;;  %701 = vmatpush.bf16.msra.mxu1 %v2638_v42  ;;  %v402_v55 = vor.u32 %v401_v43, %v397_v29  ;;  %v434_v57 = vshll.u32 %v2252_v45, 16  ;;  %v2260_v61 = vor.u32 %v2625_v50, %v2259_v49  ;;  %v2635_v12 = vld [vmem:[%s3823_s1 + $0x48] sm:$0xff]  ;;  %v2626_v13 = vld [vmem:[%s3823_s1] sm:$0xff]  ;;  %v335_v16 = vld [vmem:[%s2934_s29 + $0x10] sm:$0xf] }
  0x22   : > { %449 = vrot.lane.b32.xlu1 %v409_v37, %s2822_s16  ;;  %v427_v52 = vshll.u32 %v2248_v46, 16  ;;  %v416_v56 = vor.u32 %v415_v44, %v411_v38  ;;  %v441_v58 = vshll.u32 %v2256_v48, 16  ;;  %v425_v59 = vshrl.u32 %v2248_v46, 16  ;;  %v2634_v14 = vld [vmem:[%s3823_s1 + $0x40] sm:$0xff]  ;;  %v333_v20 = vld [vmem:[%s2934_s29 + $0x8] sm:$0xf] }
  0x23   : > { %v423_v51 = vor.u32 %v422_v47, %v418_v39  ;;  %v432_v62 = vshrl.u32 %v2252_v45, 16  ;;  %v436_v63 = vrot.slane %v434_v57, 1  ;;  %v439_v0 = vshrl.u32 %v2256_v48, 16  ;;  %v331_v17 = vld [vmem:[%s2934_s29] sm:$0xf] }
  0x24   : > { %v429_v60 = vrot.slane %v427_v52, 1  ;;  %673 = vmatpush.bf16.msra.mxu0 %v2629_v53  ;;  %v443_v1 = vrot.slane %v441_v58, 1  ;;  %v469_v3 = vshll.u32 %v2260_v61, 16  ;;  %v467_v6 = vshrl.u32 %v2260_v61, 16  ;;  %v339_v30 = vld [vmem:[%s2934_s29 + $0x20] sm:$0xf] }
  0x25   : > { %453 = vrot.lane.b32.xlu2 %v423_v51, %s2822_s16  ;;  %702 = vmatpush.bf16.msra.mxu1 %v2637_v54  ;;  %v437_v4 = vor.u32 %v436_v63, %v432_v62  ;;  %v337_v31 = vld [vmem:[%s2934_s29 + $0x18] sm:$0xf]  ;;  %v341_v39 = vld [vmem:[%s2934_s29 + $0x28] sm:$0xf]  ;;  %v343_v41 = vld [vmem:[%s2934_s29 + $0x30] sm:$0xf] }
  0x26   : > { %v430_v2 = vor.u32 %v429_v60, %v425_v59  ;;  %v444_v5 = vor.u32 %v443_v1, %v439_v0  ;;  %v471_v7 = vrot.slane %v469_v3, 1  ;;  %v345_v49 = vld [vmem:[%s2934_s29 + $0x38] sm:$0xf]  ;;  %v347_v51 = vld [vmem:[%s2934_s29 + $0x40] sm:$0xf]  ;;  %s2823_s29 = smov 32  }
  0x27   : > { %v3026_v59 = vld [vmem:[%s3824_s2] ss:$0 sm:$0xff] }
  0x28   : > { %v472_v8 = vor.u32 %v471_v7, %v467_v6  ;;  %674 = vmatpush.bf16.msra.mxu0 %v2628_v9 }
  0x29   : > { %447 = vrot.lane.b32.xlu0 %v402_v55, %s2822_s16  ;;  %703 = vmatpush.bf16.msra.mxu1 %v2636_v10 }
  0x2a   : > { %451 = vrot.lane.b32.xlu1 %v416_v56, %s2822_s16 }
  0x2c   : > { %675 = vmatpush.bf16.msra.mxu0 %v2627_v11 }
  0x2d   : > { %455 = vrot.lane.b32.xlu2 %v430_v2, %s2822_s16  ;;  %704 = vmatpush.bf16.msra.mxu1 %v2635_v12 }
  0x30   : > { %676 = vmatpush.bf16.msra.mxu0 %v2626_v13 }
  0x31   : > { %457 = vrot.lane.b32.xlu0 %v437_v4, %s2822_s16  ;;  %705 = vmatpush.bf16.msra.mxu1 %v2634_v14 }
  0x32   : > { %459 = vrot.lane.b32.xlu1 %v444_v5, %s2822_s16 }
  0x35   : > { %473 = vrot.lane.b32.xlu2 %v472_v8, %s2822_s16 }
  0x7f   : > { %v454_v29 = vpop.permute.xlu2 %453 }
  0x80   : > { %v490_v33 = vsel %vm475_vm0, %v339_v30, %v454_v29 }
  0x81   : > { %v516_v35 = vunpack.c.l.b16 %v490_v33 }
  0x87   : > { %v456_v40 = vpop.permute.xlu2 %455 }
  0x88   : > { %v493_v43 = vsel %vm475_vm0, %v341_v39, %v456_v40 }
  0x89   : > { %v517_v45 = vunpack.c.l.b16 %v493_v43 }
  0x8b   : > { %v561_v47 = vpack.c.b16 %v517_v45, %v516_v35 }
  0x8f   : > { %v474_v52 = vpop.permute.xlu2 %473 }
  0x90   : > { %v502_v54 = vsel %vm475_vm0, %v347_v51, %v474_v52  ;;  %v3075_v52 = vld [vmem:[%s3825_s3 + $0x30] sm:$0xff] }
  0x91   : > { %v520_v56 = vunpack.c.l.b16 %v502_v54 }
  0x93   : > { %v446_v15 = vpop.permute.xlu0 %445 }
  0x94   : > { %v450_v18 = vpop.permute.xlu1 %449  ;;  %v478_v21 = vsel %vm475_vm0, %v331_v17, %v446_v15 }
  0x95   : > { %v484_v19 = vsel %vm475_vm0, %v335_v16, %v450_v18  ;;  %v512_v25 = vunpack.c.l.b16 %v478_v21 }
  0x96   : > { %v514_v22 = vunpack.c.l.b16 %v484_v19 }
  0x9b   : > { %v448_v23 = vpop.permute.xlu0 %447 }
  0x9c   : > { %v481_v24 = vsel %vm475_vm0, %v333_v20, %v448_v23  ;;  %v452_v32 = vpop.permute.xlu1 %451 }
  0x9d   : > { %v513_v26 = vunpack.c.l.b16 %v481_v24  ;;  %v487_v34 = vsel %vm475_vm0, %v337_v31, %v452_v32 }
  0x9e   : > { %v515_v36 = vunpack.c.l.b16 %v487_v34 }
  0x9f   : > { %v557_v27 = vpack.c.b16 %v513_v26, %v512_v25  ;;  %v558_v28 = vpack.c.b16 %v514_v22, %v513_v26 }
  0xa0   : > { %v560_v37 = vpack.c.b16 %v516_v35, %v515_v36  ;;  %v559_v38 = vpack.c.b16 %v515_v36, %v514_v22 }
  0xa1   : > { %677 = vmatmul.bf16.vlgmr.msra.gmra.mxu0 %v557_v27  ;;  %706 = vmatmul.bf16.vlgmr.msra.gmra.mxu1 %v558_v28 }
  0xa3   : > { %v458_v42 = vpop.permute.xlu0 %457 }
  0xa4   : > { %v496_v44 = vsel %vm475_vm0, %v343_v41, %v458_v42  ;;  %v460_v50 = vpop.permute.xlu1 %459 }
  0xa5   : > { %v518_v46 = vunpack.c.l.b16 %v496_v44  ;;  %v499_v53 = vsel %vm475_vm0, %v345_v49, %v460_v50  ;;  %v3066_v49 = vld [vmem:[%s3825_s3 + $0x78] sm:$0xff] }
  0xa6   : > { %v519_v55 = vunpack.c.l.b16 %v499_v53  ;;  %1103 = vmatpush.bf16.msra.mxu3 %v3066_v49  ;;  %v3082_v53 = vld [vmem:[%s3825_s3 + $0x70] sm:$0xff]  ;;  %1169 = vmatpush.bf16.msrb.mxu1 %v3066_v49 }
  0xa7   : > { %v562_v48 = vpack.c.b16 %v518_v46, %v517_v45 }
  0xa8   : > { %v563_v57 = vpack.c.b16 %v519_v55, %v518_v46  ;;  %v564_v58 = vpack.c.b16 %v520_v56, %v519_v55  ;;  %v3061_v46 = vld [vmem:[%s3825_s3 + $0x38] sm:$0xff] }
  0xa9   : > { %1090 = vmatpush.bf16.msra.mxu2 %v3061_v46  ;;  %1156 = vmatpush.bf16.msrb.mxu0 %v3061_v46 }
  0xaa   : > { %1104 = vmatpush.bf16.msra.mxu3 %v3082_v53  ;;  %1170 = vmatpush.bf16.msrb.mxu1 %v3082_v53 }
  0xad   : > { %1091 = vmatpush.bf16.msra.mxu2 %v3075_v52  ;;  %1157 = vmatpush.bf16.msrb.mxu0 %v3075_v52 }
  0xb1   : > { %682 = vmatmul.bf16.gmra.mxu0 %v559_v38  ;;  %711 = vmatmul.bf16.gmra.mxu1 %v560_v37 }
  0xc1   : > { %687 = vmatmul.bf16.gmra.mxu0 %v561_v47  ;;  %716 = vmatmul.bf16.gmra.mxu1 %v562_v48 }
  0xd1   : > { %692 = vmatmul.bf16.gmra.mxu0 %v563_v57  ;;  %721 = vmatmul.bf16.gmra.mxu1 %v564_v58 }
 0x11e   : > { %v678_v60 = vpop.f32.mrf.mxu0  ;;  %v707_v61 = vpop.f32.mrf.mxu1 }
 0x11f   : > { %v679_v62 = vadd.f32 %v3026_v59, %v678_v60  ;;  %v3089_v60 = vld [vmem:[%s3825_s3 + $0x28] sm:$0xff] }
 0x120   : > { %1092 = vmatpush.bf16.msra.mxu2 %v3089_v60  ;;  %1158 = vmatpush.bf16.msrb.mxu0 %v3089_v60 }
 0x121   : > { %v708_v63 = vadd.f32 %v707_v61, %v679_v62  ;;  %v3096_v61 = vld [vmem:[%s3825_s3 + $0x68] sm:$0xff] }
 0x122   : > { %1105 = vmatpush.bf16.msra.mxu3 %v3096_v61  ;;  %1171 = vmatpush.bf16.msrb.mxu1 %v3096_v61 }
 0x123   : > { %v727_v0 = vmax.f32 %v708_v63, 0.0 }
 0x125   : > { %v3029_v1 = vpack.c.bf16 %v727_v0, %v727_v0 }
 0x126   : > { %v680_v2 = vpop.f32.mrf.mxu0  ;;  %v709_v3 = vpop.f32.mrf.mxu1 }
 0x127   : > { %v744_v4 = vunpack.c.l.b16 %v3029_v1  ;;  %v681_v5 = vadd.f32 %v3026_v59, %v680_v2 }
 0x129   : > { %v745_v6 = vpack.c.b16 %v744_v4, %v744_v4  ;;  %v710_v7 = vadd.f32 %v709_v3, %v681_v5  ;;  %v3110_v5 = vld [vmem:[%s3825_s3 + $0x20] sm:$0xff] }
 0x12a   : > { %1093 = vmatpush.bf16.msra.mxu2 %v3110_v5  ;;  %1159 = vmatpush.bf16.msrb.mxu0 %v3110_v5 }
 0x12b   : > { %v728_v8 = vmax.f32 %v710_v7, 0.0  ;;  %v751_v9 = vrot.slane %v745_v6, 1  ;;  %v747_v10 = vshrl.u32 %v745_v6, 16  ;;  %v3117_v6 = vld [vmem:[%s3825_s3 + $0x60] sm:$0xff] }
 0x12c   : > { %1106 = vmatpush.bf16.msra.mxu3 %v3117_v6  ;;  %1172 = vmatpush.bf16.msrb.mxu1 %v3117_v6 }
 0x12d   : > { %v3033_v11 = vpack.c.bf16 %v728_v8, %v728_v8  ;;  %752 = vrot.lane.b32.xlu1 %v751_v9, %s2822_s16  ;;  %749 = vrot.lane.b32.xlu0 %v747_v10, %s2823_s29  ;;  %v754_v12 = vrot.slane %v747_v10, 1 }
 0x12e   : > { %v683_v13 = vpop.f32.mrf.mxu0  ;;  %v712_v14 = vpop.f32.mrf.mxu1 }
 0x12f   : > { %v758_v15 = vunpack.c.l.b16 %v3033_v11  ;;  %v684_v16 = vadd.f32 %v3026_v59, %v683_v13  ;;  %755 = vrot.lane.b32.xlu2 %v754_v12, %s2824_s28  ;;  %v3124_v13 = vld [vmem:[%s3825_s3 + $0x18] sm:$0xff] }
 0x130   : > { %1094 = vmatpush.bf16.msra.mxu2 %v3124_v13  ;;  %1160 = vmatpush.bf16.msrb.mxu0 %v3124_v13 }
 0x131   : > { %v759_v17 = vpack.c.b16 %v758_v15, %v758_v15  ;;  %v713_v18 = vadd.f32 %v712_v14, %v684_v16  ;;  %v3131_v14 = vld [vmem:[%s3825_s3 + $0x58] sm:$0xff] }
 0x132   : > { %1107 = vmatpush.bf16.msra.mxu3 %v3131_v14  ;;  %1173 = vmatpush.bf16.msrb.mxu1 %v3131_v14 }
 0x133   : > { %v729_v19 = vmax.f32 %v713_v18, 0.0  ;;  %v765_v20 = vrot.slane %v759_v17, 1  ;;  %v761_v21 = vshrl.u32 %v759_v17, 16 }
 0x135   : > { %v3040_v22 = vpack.c.bf16 %v729_v19, %v729_v19  ;;  %766 = vrot.lane.b32.xlu1 %v765_v20, %s2822_s16  ;;  %763 = vrot.lane.b32.xlu0 %v761_v21, %s2823_s29  ;;  %v768_v23 = vrot.slane %v761_v21, 1  ;;  %v3145_v21 = vld [vmem:[%s3825_s3 + $0x10] sm:$0xff] }
 0x136   : > { %v685_v24 = vpop.f32.mrf.mxu0  ;;  %v714_v25 = vpop.f32.mrf.mxu1  ;;  %1095 = vmatpush.bf16.msra.mxu2 %v3145_v21  ;;  %1161 = vmatpush.bf16.msrb.mxu0 %v3145_v21 }
 0x137   : > { %v772_v26 = vunpack.c.l.b16 %v3040_v22  ;;  %v686_v27 = vadd.f32 %v3026_v59, %v685_v24  ;;  %769 = vrot.lane.b32.xlu2 %v768_v23, %s2824_s28  ;;  %v3152_v23 = vld [vmem:[%s3825_s3 + $0x50] sm:$0xff] }
 0x138   : > { %1108 = vmatpush.bf16.msra.mxu3 %v3152_v23  ;;  %1174 = vmatpush.bf16.msrb.mxu1 %v3152_v23 }
 0x139   : > { %v773_v28 = vpack.c.b16 %v772_v26, %v772_v26  ;;  %v715_v29 = vadd.f32 %v714_v25, %v686_v27 }
 0x13b   : > { %v730_v30 = vmax.f32 %v715_v29, 0.0  ;;  %v779_v31 = vrot.slane %v773_v28, 1  ;;  %v775_v32 = vshrl.u32 %v773_v28, 16  ;;  %v3159_v28 = vld [vmem:[%s3825_s3 + $0x8] sm:$0xff] }
 0x13c   : > { %v3166_v29 = vld [vmem:[%s3825_s3 + $0x48] sm:$0xff]  ;;  %1096 = vmatpush.bf16.msra.mxu2 %v3159_v28  ;;  %1162 = vmatpush.bf16.msrb.mxu0 %v3159_v28 }
 0x13d   : > { %v3047_v33 = vpack.c.bf16 %v730_v30, %v730_v30  ;;  %780 = vrot.lane.b32.xlu1 %v779_v31, %s2822_s16  ;;  %777 = vrot.lane.b32.xlu0 %v775_v32, %s2823_s29  ;;  %v782_v34 = vrot.slane %v775_v32, 1 }
 0x13e   : > { %v688_v35 = vpop.f32.mrf.mxu0  ;;  %v717_v36 = vpop.f32.mrf.mxu1  ;;  %1109 = vmatpush.bf16.msra.mxu3 %v3166_v29  ;;  %1175 = vmatpush.bf16.msrb.mxu1 %v3166_v29 }
 0x13f   : > { %v786_v37 = vunpack.c.l.b16 %v3047_v33  ;;  %v689_v38 = vadd.f32 %v3026_v59, %v688_v35  ;;  %783 = vrot.lane.b32.xlu2 %v782_v34, %s2824_s28  ;;  %v3179_v34 = vld [vmem:[%s3825_s3] sm:$0xff]  ;;  %v3185_v35 = vld [vmem:[%s3825_s3 + $0xb8] sm:$0xff] }
 0x140   : > { %1097 = vmatpush.bf16.msra.mxu2 %v3179_v34  ;;  %1163 = vmatpush.bf16.msrb.mxu0 %v3179_v34 }
 0x141   : > { %v787_v39 = vpack.c.b16 %v786_v37, %v786_v37  ;;  %v718_v40 = vadd.f32 %v717_v36, %v689_v38 }
 0x143   : > { %v731_v41 = vmax.f32 %v718_v40, 0.0  ;;  %v793_v42 = vrot.slane %v787_v39, 1  ;;  %v789_v43 = vshrl.u32 %v787_v39, 16  ;;  %v3199_v40 = vld [vmem:[%s3825_s3 + $0xb0] sm:$0xff] }
 0x144   : > { %1116 = vmatpush.bf16.msrb.mxu2 %v3185_v35  ;;  %1218 = vmatpush.bf16.msra.mxu0 %v3061_v46 }
 0x145   : > { %v3054_v44 = vpack.c.bf16 %v731_v41, %v731_v41  ;;  %794 = vrot.lane.b32.xlu1 %v793_v42, %s2822_s16  ;;  %791 = vrot.lane.b32.xlu0 %v789_v43, %s2823_s29  ;;  %v796_v45 = vrot.slane %v789_v43, 1  ;;  %v3204_v41 = vld [vmem:[%s3825_s3 + $0x40] sm:$0xff]  ;;  %v3209_v42 = vld [vmem:[%s3825_s3 + $0xf8] sm:$0xff] }
 0x146   : > { %v690_v47 = vpop.f32.mrf.mxu0  ;;  %v719_v48 = vpop.f32.mrf.mxu1  ;;  %v3216_v43 = vld [vmem:[%s3825_s3 + $0xa8] sm:$0xff]  ;;  %1110 = vmatpush.bf16.msra.mxu3 %v3204_v41  ;;  %1176 = vmatpush.bf16.msrb.mxu1 %v3204_v41 }
 0x147   : > { %v1273_v50 = vunpack.c.l.b16 %v3054_v44  ;;  %v691_v51 = vadd.f32 %v3026_v59, %v690_v47  ;;  %797 = vrot.lane.b32.xlu2 %v796_v45, %s2824_s28  ;;  %v3227_v45 = vld [vmem:[%s3825_s3 + $0xa0] sm:$0xff]  ;;  %v3232_v47 = vld [vmem:[%s3825_s3 + $0xf0] sm:$0xff] }
 0x148   : > { %1117 = vmatpush.bf16.msrb.mxu2 %v3199_v40  ;;  %1219 = vmatpush.bf16.msra.mxu0 %v3075_v52 }
 0x149   : > { %v1274_v54 = vpack.c.b16 %v1273_v50, %v1273_v50  ;;  %v720_v55 = vadd.f32 %v719_v48, %v691_v51  ;;  %v3240_v48 = vld [vmem:[%s3825_s3 + $0x98] sm:$0xff]  ;;  %v3245_v50 = vld [vmem:[%s3825_s3 + $0xe8] sm:$0xff]  ;;  %v3255_v51 = vld [vmem:[%s3825_s3 + $0x90] sm:$0xff] }
 0x14a   : > { %1129 = vmatpush.bf16.msrb.mxu3 %v3209_v42  ;;  %1231 = vmatpush.bf16.msra.mxu1 %v3066_v49 }
 0x14b   : > { %v732_v56 = vmax.f32 %v720_v55, 0.0  ;;  %v1280_v57 = vrot.slane %v1274_v54, 1  ;;  %v1276_v58 = vshrl.u32 %v1274_v54, 16  ;;  %v3260_v54 = vld [vmem:[%s3825_s3 + $0xe0] sm:$0xff]  ;;  %v3268_v55 = vld [vmem:[%s3825_s3 + $0x88] sm:$0xff] }
 0x14c   : > { %1118 = vmatpush.bf16.msrb.mxu2 %v3216_v43  ;;  %1220 = vmatpush.bf16.msra.mxu0 %v3089_v60 }
 0x14d   : > { %v3098_v62 = vpack.c.bf16 %v732_v56, %v732_v56  ;;  %1281 = vrot.lane.b32.xlu1 %v1280_v57, %s2822_s16  ;;  %1278 = vrot.lane.b32.xlu0 %v1276_v58, %s2823_s29  ;;  %v1283_v63 = vrot.slane %v1276_v58, 1  ;;  %v3273_v56 = vld [vmem:[%s3825_s3 + $0xd8] sm:$0xff]  ;;  %v3283_v57 = vld [vmem:[%s3825_s3 + $0x80] sm:$0xff] }
 0x14e   : > { %v693_v0 = vpop.f32.mrf.mxu0  ;;  %v722_v2 = vpop.f32.mrf.mxu1  ;;  %1232 = vmatpush.bf16.msra.mxu1 %v3082_v53  ;;  %1130 = vmatpush.bf16.msrb.mxu3 %v3232_v47  ;;  %v3288_v58 = vld [vmem:[%s3825_s3 + $0xd0] sm:$0xff] }
 0x14f   : > { %v1287_v3 = vunpack.c.l.b16 %v3098_v62  ;;  %v694_v4 = vadd.f32 %v3026_v59, %v693_v0  ;;  %1284 = vrot.lane.b32.xlu2 %v1283_v63, %s2824_s28  ;;  %v3298_v63 = vld [vmem:[%s3825_s3 + $0xc8] sm:$0xff]  ;;  %v3305_v0 = vld [vmem:[%s3825_s3 + $0xc0] sm:$0xff] }
 0x150   : > { %1119 = vmatpush.bf16.msrb.mxu2 %v3227_v45  ;;  %1221 = vmatpush.bf16.msra.mxu0 %v3110_v5 }
 0x151   : > { %v1288_v7 = vpack.c.b16 %v1287_v3, %v1287_v3  ;;  %v723_v8 = vadd.f32 %v722_v2, %v694_v4 }
 0x152   : > { %1233 = vmatpush.bf16.msra.mxu1 %v3096_v61  ;;  %1131 = vmatpush.bf16.msrb.mxu3 %v3245_v50 }
 0x153   : > { %v733_v9 = vmax.f32 %v723_v8, 0.0  ;;  %v1294_v10 = vrot.slane %v1288_v7, 1  ;;  %v1290_v12 = vshrl.u32 %v1288_v7, 16 }
 0x154   : > { %1120 = vmatpush.bf16.msrb.mxu2 %v3240_v48  ;;  %1222 = vmatpush.bf16.msra.mxu0 %v3124_v13 }
 0x155   : > { %v3133_v15 = vpack.c.bf16 %v733_v9, %v733_v9  ;;  %1295 = vrot.lane.b32.xlu1 %v1294_v10, %s2822_s16  ;;  %1292 = vrot.lane.b32.xlu0 %v1290_v12, %s2823_s29  ;;  %v1297_v16 = vrot.slane %v1290_v12, 1 }
 0x156   : > { %v695_v17 = vpop.f32.mrf.mxu0  ;;  %v724_v18 = vpop.f32.mrf.mxu1  ;;  %1234 = vmatpush.bf16.msra.mxu1 %v3117_v6  ;;  %1132 = vmatpush.bf16.msrb.mxu3 %v3260_v54 }
 0x157   : > { %v1489_v19 = vunpack.c.l.b16 %v3133_v15  ;;  %v696_v20 = vadd.f32 %v3026_v59, %v695_v17  ;;  %1298 = vrot.lane.b32.xlu2 %v1297_v16, %s2824_s28 }
 0x158   : > { %1121 = vmatpush.bf16.msrb.mxu2 %v3255_v51  ;;  %1223 = vmatpush.bf16.msra.mxu0 %v3145_v21 }
 0x159   : > { %v1490_v24 = vpack.c.b16 %v1489_v19, %v1489_v19  ;;  %v725_v59 = vadd.f32 %v724_v18, %v696_v20 }
 0x15a   : > { %1235 = vmatpush.bf16.msra.mxu1 %v3131_v14  ;;  %1133 = vmatpush.bf16.msrb.mxu3 %v3273_v56 }
 0x15b   : > { %v734_v25 = vmax.f32 %v725_v59, 0.0  ;;  %v1492_v26 = vshrl.u32 %v1490_v24, 16  ;;  %v1496_v27 = vrot.slane %v1490_v24, 1 }
 0x15c   : > { %1122 = vmatpush.bf16.msrb.mxu2 %v3268_v55  ;;  %1224 = vmatpush.bf16.msra.mxu0 %v3159_v28 }
 0x15d   : > { %v3168_v30 = vpack.c.bf16 %v734_v25, %v734_v25  ;;  %1494 = vrot.lane.b32.xlu0 %v1492_v26, %s2823_s29  ;;  %1497 = vrot.lane.b32.xlu1 %v1496_v27, %s2822_s16  ;;  %v1499_v31 = vrot.slane %v1492_v26, 1 }
 0x15e   : > { %1236 = vmatpush.bf16.msra.mxu1 %v3152_v23  ;;  %1134 = vmatpush.bf16.msrb.mxu3 %v3288_v58 }
 0x15f   : > { %v1503_v32 = vunpack.c.l.b16 %v3168_v30  ;;  %1500 = vrot.lane.b32.xlu2 %v1499_v31, %s2824_s28 }
 0x160   : > { %1123 = vmatpush.bf16.msrb.mxu2 %v3283_v57  ;;  %1225 = vmatpush.bf16.msra.mxu0 %v3179_v34 }
 0x161   : > { %v1504_v36 = vpack.c.b16 %v1503_v32, %v1503_v32 }
 0x162   : > { %1237 = vmatpush.bf16.msra.mxu1 %v3166_v29  ;;  %1135 = vmatpush.bf16.msrb.mxu3 %v3298_v63 }
 0x163   : > { %v1506_v37 = vshrl.u32 %v1504_v36, 16  ;;  %v1510_v38 = vrot.slane %v1504_v36, 1 }
 0x165   : > { %1508 = vrot.lane.b32.xlu0 %v1506_v37, %s2823_s29  ;;  %1511 = vrot.lane.b32.xlu1 %v1510_v38, %s2822_s16  ;;  %v1513_v39 = vrot.slane %v1506_v37, 1  ;;  %s2161_s29 = scalar_lea.hbm %s3831_s9, %s2896_s13 }
 0x166   : > { %1238 = vmatpush.bf16.msra.mxu1 %v3204_v41  ;;  %1136 = vmatpush.bf16.msrb.mxu3 %v3305_v0  ;;  %s2165_s23 = sshll.u32 %s2161_s29, 4  ;;  %s2166_s23 = int_to_ptr.hbm [resolvable:$true] %s2165_s23 }
 0x167   : > { %1514 = vrot.lane.b32.xlu2 %v1513_v39, %s2824_s28  ;;  %s2772_s25 = sshra.s32 %s2166_s23, 4  ;;  %s2773_s25 = int_to_ptr.hbm [resolvable:$true] %s2772_s25 }
 0x168   : > { %s2774_s26 = scalar_lea.hbm %s2773_s25, 1  ;;  %p2779_p0 = scmp.lt.s32.totalorder %s2773_s25, %s3831_s9 }
 0x169   : > { %p2775_p11 = scmp.ne.s32.totalorder %s2773_s25, %s2774_s26  ;;  %p2780_p1 = scmp.lt.s32.totalorder %s2778_s17, %s2774_s26 }
 0x16b   : > { %p2776_p12 = pnand %p2775_p11, %p2913_p5  ;;  %p2781_p2 = por %p2780_p1, %p2779_p0 }
 0x16d   : > { %p2777_p13 = pneg %p2776_p12 }
 0x16f   : > { %p2782_p3 = pnand %p2781_p2, %p2777_p13 }
 0x189   : > { %v756_v2 = vpop.permute.xlu2 %755 }
 0x191   : > { %v770_v3 = vpop.permute.xlu2 %769 }
 0x199   : > { %v784_v16 = vpop.permute.xlu2 %783 }
 0x19f   : > { %v753_v4 = vpop.permute.xlu1 %752  ;;  %v750_v7 = vpop.permute.xlu0 %749 }
 0x1a0   : > { %v802_v8 = vsel %vm799_vm1, %v3029_v1, %v750_v7 }
 0x1a1   : > { %v804_v9 = vsel %vm475_vm0, %v802_v8, %v753_v4  ;;  %v798_v25 = vpop.permute.xlu2 %797 }
 0x1a2   : > { %v807_v10 = vsel %vm805_vm2, %v804_v9, %v756_v2 }
 0x1a3   : > { %1098 = vmatmul.bf16.vlgmr.msra.gmra.mxu2 %v807_v10  ;;  %v1148_v12 = vrot.slane %v807_v10, 1  ;;  %v1210_v32 = vrot.slane %v807_v10, 2 }
 0x1a4   : > { %1182 = vmatpush.bf16.msra.mxu2 %v3185_v35 }
 0x1a5   : > { %1164 = vmatmul.bf16.vlgmr.msrb.gmra.mxu0 %v1148_v12 }
 0x1a6   : > { %1316 = vmatpush.bf16.msrb.mxu0 %v3061_v46 }
 0x1a7   : > { %v767_v17 = vpop.permute.xlu1 %766  ;;  %v764_v18 = vpop.permute.xlu0 %763 }
 0x1a8   : > { %v811_v19 = vsel %vm799_vm1, %v3033_v11, %v764_v18  ;;  %1183 = vmatpush.bf16.msra.mxu2 %v3199_v40 }
 0x1a9   : > { %v813_v1 = vsel %vm475_vm0, %v811_v19, %v767_v17  ;;  %v1285_v39 = vpop.permute.xlu2 %1284 }
 0x1aa   : > { %1317 = vmatpush.bf16.msrb.mxu0 %v3075_v52  ;;  %v815_v20 = vsel %vm805_vm2, %v813_v1, %v770_v3 }
 0x1ab   : > { %1111 = vmatmul.bf16.vlgmr.msra.gmra.mxu3 %v815_v20  ;;  %v1149_v24 = vrot.slane %v815_v20, 1  ;;  %v1211_v3 = vrot.slane %v815_v20, 2 }
 0x1ac   : > { %1184 = vmatpush.bf16.msra.mxu2 %v3216_v43  ;;  %1195 = vmatpush.bf16.msra.mxu3 %v3209_v42 }
 0x1ad   : > { %1177 = vmatmul.bf16.vlgmr.msrb.gmra.mxu1 %v1149_v24 }
 0x1ae   : > { %1318 = vmatpush.bf16.msrb.mxu0 %v3089_v60  ;;  %1329 = vmatpush.bf16.msrb.mxu1 %v3066_v49 }
 0x1af   : > { %v781_v11 = vpop.permute.xlu1 %780  ;;  %v778_v59 = vpop.permute.xlu0 %777 }
 0x1b0   : > { %v819_v26 = vsel %vm799_vm1, %v3040_v22, %v778_v59  ;;  %1185 = vmatpush.bf16.msra.mxu2 %v3227_v45  ;;  %1196 = vmatpush.bf16.msra.mxu3 %v3232_v47 }
 0x1b1   : > { %v821_v27 = vsel %vm475_vm0, %v819_v26, %v781_v11 }
 0x1b2   : > { %1319 = vmatpush.bf16.msrb.mxu0 %v3110_v5  ;;  %1330 = vmatpush.bf16.msrb.mxu1 %v3082_v53  ;;  %v3332_v31 = vsel %vm805_vm2, %v821_v27, %v784_v16 }
 0x1b3   : > { %1124 = vmatmul.bf16.vlgmr.msrb.gmra.mxu2 %v3332_v31  ;;  %v1150_v9 = vrot.slane %v3332_v31, 1 }
 0x1b4   : > { %1186 = vmatpush.bf16.msra.mxu2 %v3240_v48  ;;  %1197 = vmatpush.bf16.msra.mxu3 %v3245_v50 }
 0x1b5   : > { %1226 = vmatmul.bf16.vlgmr.msra.gmra.mxu0 %v1210_v32 }
 0x1b6   : > { %1320 = vmatpush.bf16.msrb.mxu0 %v3124_v13  ;;  %1331 = vmatpush.bf16.msrb.mxu1 %v3096_v61 }
 0x1b7   : > { %v795_v22 = vpop.permute.xlu1 %794  ;;  %v792_v36 = vpop.permute.xlu0 %791 }
 0x1b8   : > { %v827_v37 = vsel %vm799_vm1, %v3047_v33, %v792_v36  ;;  %1187 = vmatpush.bf16.msra.mxu2 %v3255_v51  ;;  %1198 = vmatpush.bf16.msra.mxu3 %v3260_v54 }
 0x1b9   : > { %v829_v38 = vsel %vm475_vm0, %v827_v37, %v795_v22 }
 0x1ba   : > { %1321 = vmatpush.bf16.msrb.mxu0 %v3145_v21  ;;  %1332 = vmatpush.bf16.msrb.mxu1 %v3117_v6  ;;  %v3347_v2 = vsel %vm805_vm2, %v829_v38, %v798_v25 }
 0x1bb   : > { %1137 = vmatmul.bf16.vlgmr.msrb.gmra.mxu3 %v3347_v2  ;;  %v1151_v19 = vrot.slane %v3347_v2, 1  ;;  %v1213_v37 = vrot.slane %v3347_v2, 2 }
 0x1bc   : > { %1188 = vmatpush.bf16.msra.mxu2 %v3268_v55  ;;  %1199 = vmatpush.bf16.msra.mxu3 %v3273_v56 }
 0x1bd   : > { %1239 = vmatmul.bf16.vlgmr.msra.gmra.mxu1 %v1211_v3 }
 0x1be   : > { %1322 = vmatpush.bf16.msrb.mxu0 %v3159_v28  ;;  %1333 = vmatpush.bf16.msrb.mxu1 %v3131_v14 }
 0x1bf   : > { %v1282_v33 = vpop.permute.xlu1 %1281  ;;  %v1279_v4 = vpop.permute.xlu0 %1278 }
 0x1c0   : > { %v1302_v7 = vsel %vm799_vm1, %v3054_v44, %v1279_v4  ;;  %1189 = vmatpush.bf16.msra.mxu2 %v3283_v57  ;;  %1200 = vmatpush.bf16.msra.mxu3 %v3288_v58  ;;  %v1299_v44 = vpop.permute.xlu2 %1298  ;;  %v3522_v4 = vld [vmem:[%s3826_s4] sm:$0x1] }
 0x1c1   : > { %v1304_v8 = vsel %vm475_vm0, %v1302_v7, %v1282_v33 }
 0x1c2   : > { %1323 = vmatpush.bf16.msrb.mxu0 %v3179_v34  ;;  %1334 = vmatpush.bf16.msrb.mxu1 %v3152_v23  ;;  %v3364_v10 = vsel %vm805_vm2, %v1304_v8, %v1285_v39 }
 0x1c3   : > { %1190 = vmatmul.bf16.vlgmr.msra.gmra.mxu2 %v1150_v9 }
 0x1c4   : > { %1244 = vmatpush.bf16.msrb.mxu2 %v3185_v35  ;;  %1201 = vmatpush.bf16.msra.mxu3 %v3298_v63 }
 0x1c5   : > { %1324 = vmatmul.bf16.vlgmr.msrb.gmra.mxu0 %v3332_v31 }
 0x1c6   : > { %1376 = vmatpush.bf16.msra.mxu0 %v3061_v46  ;;  %1335 = vmatpush.bf16.msrb.mxu1 %v3166_v29 }
 0x1c7   : > { %v1296_v12 = vpop.permute.xlu1 %1295  ;;  %v1293_v16 = vpop.permute.xlu0 %1292 }
 0x1c8   : > { %1245 = vmatpush.bf16.msrb.mxu2 %v3199_v40  ;;  %v1310_v17 = vsel %vm799_vm1, %v3098_v62, %v1293_v16  ;;  %1202 = vmatpush.bf16.msra.mxu3 %v3305_v0  ;;  %v1501_v62 = vpop.permute.xlu2 %1500 }
 0x1c9   : > { %v1312_v18 = vsel %vm475_vm0, %v1310_v17, %v1296_v12  ;;  %v1430_v17 = vrot.slane %v3364_v10, 2 }
 0x1ca   : > { %1377 = vmatpush.bf16.msra.mxu0 %v3075_v52  ;;  %1336 = vmatpush.bf16.msrb.mxu1 %v3204_v41  ;;  %v3383_v1 = vsel %vm805_vm2, %v1312_v18, %v1299_v44 }
 0x1cb   : > { %1203 = vmatmul.bf16.vlgmr.msra.gmra.mxu3 %v1151_v19  ;;  %v1373_v38 = vrot.slane %v3383_v1, 1 }
 0x1cc   : > { %1246 = vmatpush.bf16.msrb.mxu2 %v3216_v43  ;;  %1257 = vmatpush.bf16.msrb.mxu3 %v3209_v42 }
 0x1cd   : > { %1337 = vmatmul.bf16.vlgmr.msrb.gmra.mxu1 %v3347_v2 }
 0x1ce   : > { %1378 = vmatpush.bf16.msra.mxu0 %v3089_v60  ;;  %1389 = vmatpush.bf16.msra.mxu1 %v3066_v49 }
 0x1cf   : > { %v1495_v20 = vpop.permute.xlu0 %1494  ;;  %v1498_v24 = vpop.permute.xlu1 %1497 }
 0x1d0   : > { %1247 = vmatpush.bf16.msrb.mxu2 %v3227_v45  ;;  %1258 = vmatpush.bf16.msrb.mxu3 %v3232_v47  ;;  %v1518_v11 = vsel %vm799_vm1, %v3133_v15, %v1495_v20  ;;  %v1515_v26 = vpop.permute.xlu2 %1514 }
 0x1d1   : > { %v1520_v59 = vsel %vm475_vm0, %v1518_v11, %v1498_v24 }
 0x1d2   : > { %1379 = vmatpush.bf16.msra.mxu0 %v3110_v5  ;;  %1390 = vmatpush.bf16.msra.mxu1 %v3082_v53  ;;  %v3398_v25 = vsel %vm805_vm2, %v1520_v59, %v1501_v62 }
 0x1d4   : > { %1248 = vmatpush.bf16.msrb.mxu2 %v3240_v48  ;;  %1259 = vmatpush.bf16.msrb.mxu3 %v3245_v50 }
 0x1d6   : > { %1380 = vmatpush.bf16.msra.mxu0 %v3124_v13  ;;  %1391 = vmatpush.bf16.msra.mxu1 %v3096_v61 }
 0x1d7   : > { %v1509_v15 = vpop.permute.xlu0 %1508  ;;  %v1512_v27 = vpop.permute.xlu1 %1511 }
 0x1d8   : > { %1249 = vmatpush.bf16.msrb.mxu2 %v3255_v51  ;;  %1260 = vmatpush.bf16.msrb.mxu3 %v3260_v54  ;;  %v1526_v32 = vsel %vm799_vm1, %v3168_v30, %v1509_v15  ;;  %v1212_v30 = vrot.slane %v3332_v31, 2  ;;  %v1372_v31 = vrot.slane %v3364_v10, 1  ;;  %v1431_v15 = vrot.slane %v3383_v1, 2 }
 0x1d9   : > { %v1528_v22 = vsel %vm475_vm0, %v1526_v32, %v1512_v27 }
 0x1da   : > { %1381 = vmatpush.bf16.msra.mxu0 %v3145_v21  ;;  %1392 = vmatpush.bf16.msra.mxu1 %v3117_v6  ;;  %v3412_v36 = vsel %vm805_vm2, %v1528_v22, %v1515_v26 }
 0x1dc   : > { %1250 = vmatpush.bf16.msrb.mxu2 %v3268_v55  ;;  %1261 = vmatpush.bf16.msrb.mxu3 %v3273_v56 }
 0x1de   : > { %1382 = vmatpush.bf16.msra.mxu0 %v3159_v28  ;;  %1393 = vmatpush.bf16.msra.mxu1 %v3131_v14 }
 0x1e0   : > { %1251 = vmatpush.bf16.msrb.mxu2 %v3283_v57  ;;  %1262 = vmatpush.bf16.msrb.mxu3 %v3288_v58 }
 0x1e2   : > { %1383 = vmatpush.bf16.msra.mxu0 %v3179_v34  ;;  %1394 = vmatpush.bf16.msra.mxu1 %v3152_v23 }
 0x1e3   : > { %1252 = vmatmul.bf16.vlgmr.msrb.gmra.mxu2 %v1212_v30 }
 0x1e4   : > { %1342 = vmatpush.bf16.msra.mxu2 %v3185_v35  ;;  %1263 = vmatpush.bf16.msrb.mxu3 %v3298_v63 }
 0x1e5   : > { %1384 = vmatmul.bf16.vlgmr.msra.gmra.mxu0 %v1150_v9 }
 0x1e6   : > { %1434 = vmatpush.bf16.msrb.mxu0 %v3061_v46  ;;  %1395 = vmatpush.bf16.msra.mxu1 %v3166_v29 }
 0x1e8   : > { %1343 = vmatpush.bf16.msra.mxu2 %v3199_v40  ;;  %1264 = vmatpush.bf16.msrb.mxu3 %v3305_v0 }
 0x1ea   : > { %1435 = vmatpush.bf16.msrb.mxu0 %v3075_v52  ;;  %1396 = vmatpush.bf16.msra.mxu1 %v3204_v41 }
 0x1eb   : > { %1265 = vmatmul.bf16.vlgmr.msrb.gmra.mxu3 %v1213_v37 }
 0x1ec   : > { %1344 = vmatpush.bf16.msra.mxu2 %v3216_v43  ;;  %1355 = vmatpush.bf16.msra.mxu3 %v3209_v42 }
 0x1ed   : > { %1397 = vmatmul.bf16.vlgmr.msra.gmra.mxu1 %v1151_v19 }
 0x1ee   : > { %1436 = vmatpush.bf16.msrb.mxu0 %v3089_v60  ;;  %1447 = vmatpush.bf16.msrb.mxu1 %v3066_v49 }
 0x1f0   : > { %1345 = vmatpush.bf16.msra.mxu2 %v3227_v45  ;;  %1356 = vmatpush.bf16.msra.mxu3 %v3232_v47 }
 0x1f2   : > { %1437 = vmatpush.bf16.msrb.mxu0 %v3110_v5  ;;  %1448 = vmatpush.bf16.msrb.mxu1 %v3082_v53 }
 0x1f4   : > { %1346 = vmatpush.bf16.msra.mxu2 %v3240_v48  ;;  %1357 = vmatpush.bf16.msra.mxu3 %v3245_v50 }
 0x1f6   : > { %1438 = vmatpush.bf16.msrb.mxu0 %v3124_v13  ;;  %1449 = vmatpush.bf16.msrb.mxu1 %v3096_v61 }
 0x1f8   : > { %1347 = vmatpush.bf16.msra.mxu2 %v3255_v51  ;;  %1358 = vmatpush.bf16.msra.mxu3 %v3260_v54 }
 0x1fa   : > { %1439 = vmatpush.bf16.msrb.mxu0 %v3145_v21  ;;  %1450 = vmatpush.bf16.msrb.mxu1 %v3117_v6 }
 0x1fc   : > { %1348 = vmatpush.bf16.msra.mxu2 %v3268_v55  ;;  %1359 = vmatpush.bf16.msra.mxu3 %v3273_v56 }
 0x1fe   : > { %1440 = vmatpush.bf16.msrb.mxu0 %v3159_v28  ;;  %1451 = vmatpush.bf16.msrb.mxu1 %v3131_v14 }
 0x200   : > { %1349 = vmatpush.bf16.msra.mxu2 %v3283_v57  ;;  %1360 = vmatpush.bf16.msra.mxu3 %v3288_v58 }
 0x202   : > { %1441 = vmatpush.bf16.msrb.mxu0 %v3179_v34  ;;  %1452 = vmatpush.bf16.msrb.mxu1 %v3152_v23 }
 0x203   : > { %1350 = vmatmul.bf16.vlgmr.msra.gmra.mxu2 %v3364_v10 }
 0x204   : > { %1402 = vmatpush.bf16.msrb.mxu2 %v3185_v35  ;;  %1361 = vmatpush.bf16.msra.mxu3 %v3298_v63 }
 0x205   : > { %1442 = vmatmul.bf16.vlgmr.msrb.gmra.mxu0 %v1212_v30 }
 0x206   : > { %1532 = vmatpush.bf16.msra.mxu0 %v3061_v46  ;;  %1453 = vmatpush.bf16.msrb.mxu1 %v3166_v29 }
 0x208   : > { %1403 = vmatpush.bf16.msrb.mxu2 %v3199_v40  ;;  %1362 = vmatpush.bf16.msra.mxu3 %v3305_v0 }
 0x20a   : > { %1533 = vmatpush.bf16.msra.mxu0 %v3075_v52  ;;  %1454 = vmatpush.bf16.msrb.mxu1 %v3204_v41 }
 0x20b   : > { %1363 = vmatmul.bf16.vlgmr.msra.gmra.mxu3 %v3383_v1 }
 0x20c   : > { %1404 = vmatpush.bf16.msrb.mxu2 %v3216_v43  ;;  %1415 = vmatpush.bf16.msrb.mxu3 %v3209_v42 }
 0x20d   : > { %1455 = vmatmul.bf16.vlgmr.msrb.gmra.mxu1 %v1213_v37 }
 0x20e   : > { %1534 = vmatpush.bf16.msra.mxu0 %v3089_v60  ;;  %1545 = vmatpush.bf16.msra.mxu1 %v3066_v49 }
 0x210   : > { %1405 = vmatpush.bf16.msrb.mxu2 %v3227_v45  ;;  %1416 = vmatpush.bf16.msrb.mxu3 %v3232_v47 }
 0x212   : > { %1535 = vmatpush.bf16.msra.mxu0 %v3110_v5  ;;  %1546 = vmatpush.bf16.msra.mxu1 %v3082_v53 }
 0x214   : > { %1406 = vmatpush.bf16.msrb.mxu2 %v3240_v48  ;;  %1417 = vmatpush.bf16.msrb.mxu3 %v3245_v50 }
 0x216   : > { %1536 = vmatpush.bf16.msra.mxu0 %v3124_v13  ;;  %1547 = vmatpush.bf16.msra.mxu1 %v3096_v61 }
 0x218   : > { %1407 = vmatpush.bf16.msrb.mxu2 %v3255_v51  ;;  %1418 = vmatpush.bf16.msrb.mxu3 %v3260_v54 }
 0x21a   : > { %1537 = vmatpush.bf16.msra.mxu0 %v3145_v21  ;;  %1548 = vmatpush.bf16.msra.mxu1 %v3117_v6 }
 0x21c   : > { %1408 = vmatpush.bf16.msrb.mxu2 %v3268_v55  ;;  %1419 = vmatpush.bf16.msrb.mxu3 %v3273_v56 }
 0x21e   : > { %1538 = vmatpush.bf16.msra.mxu0 %v3159_v28  ;;  %1549 = vmatpush.bf16.msra.mxu1 %v3131_v14 }
 0x220   : > { %1409 = vmatpush.bf16.msrb.mxu2 %v3283_v57  ;;  %1420 = vmatpush.bf16.msrb.mxu3 %v3288_v58 }
 0x222   : > { %1539 = vmatpush.bf16.msra.mxu0 %v3179_v34  ;;  %1550 = vmatpush.bf16.msra.mxu1 %v3152_v23  ;;  %v3503_v39 = vpop.f32.mrf.mxu0 }
 0x223   : > { %1410 = vmatmul.bf16.vlgmr.msrb.gmra.mxu2 %v1372_v31  ;;  %v1166_v22 = vadd.f32 %v3503_v39, %v3522_v4 }
 0x224   : > { %1460 = vmatpush.bf16.msra.mxu2 %v3185_v35  ;;  %1421 = vmatpush.bf16.msrb.mxu3 %v3298_v63 }
 0x225   : > { %1540 = vmatmul.bf16.vlgmr.msra.gmra.mxu0 %v3364_v10 }
 0x226   : > { %1592 = vmatpush.bf16.msrb.mxu0 %v3061_v46  ;;  %1551 = vmatpush.bf16.msra.mxu1 %v3166_v29  ;;  %v1099_v2 = vpop.f32.mrf.mxu2 }
 0x227   : > { %v1100_v7 = vadd.f32 %v1099_v2, %v3522_v4 }
 0x228   : > { %1461 = vmatpush.bf16.msra.mxu2 %v3199_v40  ;;  %1422 = vmatpush.bf16.msrb.mxu3 %v3305_v0 }
 0x22a   : > { %1593 = vmatpush.bf16.msrb.mxu0 %v3075_v52  ;;  %1552 = vmatpush.bf16.msra.mxu1 %v3204_v41  ;;  %v1167_v3 = vpop.f32.mrf.mxu0  ;;  %v3516_v33 = vpop.f32.mrf.mxu1 }
 0x22b   : > { %1423 = vmatmul.bf16.vlgmr.msrb.gmra.mxu3 %v1373_v38 }
 0x22c   : > { %1462 = vmatpush.bf16.msra.mxu2 %v3216_v43  ;;  %1473 = vmatpush.bf16.msra.mxu3 %v3209_v42 }
 0x22d   : > { %1553 = vmatmul.bf16.vlgmr.msra.gmra.mxu1 %v3383_v1 }
 0x22e   : > { %1594 = vmatpush.bf16.msrb.mxu0 %v3089_v60  ;;  %1605 = vmatpush.bf16.msrb.mxu1 %v3066_v49  ;;  %v1101_v8 = vpop.f32.mrf.mxu2  ;;  %v1112_v9 = vpop.f32.mrf.mxu3 }
 0x22f   : > { %v1113_v44 = vadd.f32 %v1112_v9, %v1100_v7  ;;  %v1588_v8 = vrot.slane %v3398_v25, 1 }
 0x230   : > { %1463 = vmatpush.bf16.msra.mxu2 %v3227_v45  ;;  %1474 = vmatpush.bf16.msra.mxu3 %v3232_v47 }
 0x232   : > { %1595 = vmatpush.bf16.msrb.mxu0 %v3110_v5  ;;  %1606 = vmatpush.bf16.msrb.mxu1 %v3082_v53  ;;  %v1180_v12 = vpop.f32.mrf.mxu1  ;;  %v1227_v16 = vpop.f32.mrf.mxu0 }
 0x233   : > { %v1228_v20 = vadd.f32 %v1227_v16, %v3522_v4  ;;  %v1589_v12 = vrot.slane %v3412_v36, 1 }
 0x234   : > { %1464 = vmatpush.bf16.msra.mxu2 %v3240_v48  ;;  %1475 = vmatpush.bf16.msra.mxu3 %v3245_v50 }
 0x236   : > { %1596 = vmatpush.bf16.msrb.mxu0 %v3124_v13  ;;  %1607 = vmatpush.bf16.msrb.mxu1 %v3096_v61  ;;  %v1114_v18 = vpop.f32.mrf.mxu3  ;;  %v1125_v19 = vpop.f32.mrf.mxu2 }
 0x237   : > { %v1126_v62 = vadd.f32 %v1125_v19, %v1113_v44 }
 0x238   : > { %1465 = vmatpush.bf16.msra.mxu2 %v3255_v51  ;;  %1476 = vmatpush.bf16.msra.mxu3 %v3260_v54 }
 0x23a   : > { %1597 = vmatpush.bf16.msrb.mxu0 %v3145_v21  ;;  %1608 = vmatpush.bf16.msrb.mxu1 %v3117_v6  ;;  %v1229_v24 = vpop.f32.mrf.mxu0  ;;  %v1240_v11 = vpop.f32.mrf.mxu1 }
 0x23b   : > { %v3546_v59 = vadd.f32 %v1240_v11, %v1228_v20  ;;  %v2678_v24 = vld [vmem:[%s3827_s5 + $0x20] sm:$0xff] }
 0x23c   : > { %1466 = vmatpush.bf16.msra.mxu2 %v3268_v55  ;;  %1477 = vmatpush.bf16.msra.mxu3 %v3273_v56 }
 0x23e   : > { %1598 = vmatpush.bf16.msrb.mxu0 %v3159_v28  ;;  %1609 = vmatpush.bf16.msrb.mxu1 %v3131_v14  ;;  %v1138_v26 = vpop.f32.mrf.mxu3 }
 0x23f   : > { %v3554_v27 = vadd.f32 %v1138_v26, %v1126_v62  ;;  %v2681_v62 = vld [vmem:[%s3827_s5 + $0x38] sm:$0xff] }
 0x240   : > { %1467 = vmatpush.bf16.msra.mxu2 %v3283_v57  ;;  %1478 = vmatpush.bf16.msra.mxu3 %v3288_v58 }
 0x242   : > { %1599 = vmatpush.bf16.msrb.mxu0 %v3179_v34  ;;  %1610 = vmatpush.bf16.msrb.mxu1 %v3152_v23  ;;  %v3561_v32 = vpop.f32.mrf.mxu0 }
 0x243   : > { %1468 = vmatmul.bf16.vlgmr.msra.gmra.mxu2 %v1430_v17 }
 0x244   : > { %1558 = vmatpush.bf16.msrb.mxu2 %v3185_v35  ;;  %1479 = vmatpush.bf16.msra.mxu3 %v3298_v63 }
 0x245   : > { %1600 = vmatmul.bf16.vlgmr.msrb.gmra.mxu0 %v1372_v31 }
 0x246   : > { %1650 = vmatpush.bf16.msra.mxu0 %v3061_v46  ;;  %1611 = vmatpush.bf16.msrb.mxu1 %v3166_v29  ;;  %v1127_v46 = vpop.f32.mrf.mxu2 }
 0x248   : > { %1559 = vmatpush.bf16.msrb.mxu2 %v3199_v40  ;;  %1480 = vmatpush.bf16.msra.mxu3 %v3305_v0 }
 0x24a   : > { %1651 = vmatpush.bf16.msra.mxu0 %v3075_v52  ;;  %1612 = vmatpush.bf16.msrb.mxu1 %v3204_v41  ;;  %v1242_v52 = vpop.f32.mrf.mxu1 }
 0x24b   : > { %1481 = vmatmul.bf16.vlgmr.msra.gmra.mxu3 %v1431_v15  ;;  %v2676_v52 = vld [vmem:[%s3827_s5 + $0x10] sm:$0xff] }
 0x24c   : > { %1560 = vmatpush.bf16.msrb.mxu2 %v3216_v43  ;;  %1571 = vmatpush.bf16.msrb.mxu3 %v3209_v42 }
 0x24d   : > { %1613 = vmatmul.bf16.vlgmr.msrb.gmra.mxu1 %v1373_v38 }
 0x24e   : > { %1652 = vmatpush.bf16.msra.mxu0 %v3089_v60  ;;  %1663 = vmatpush.bf16.msra.mxu1 %v3066_v49  ;;  %v1140_v60 = vpop.f32.mrf.mxu3  ;;  %v1191_v49 = vpop.f32.mrf.mxu2 }
 0x250   : > { %1561 = vmatpush.bf16.msrb.mxu2 %v3227_v45  ;;  %1572 = vmatpush.bf16.msrb.mxu3 %v3232_v47 }
 0x252   : > { %1653 = vmatpush.bf16.msra.mxu0 %v3110_v5  ;;  %1664 = vmatpush.bf16.msra.mxu1 %v3082_v53  ;;  %v1327_v5 = vpop.f32.mrf.mxu0  ;;  %v3575_v1 = vpop.f32.mrf.mxu1  ;;  %v1179_v53 = vadd.f32 %v3516_v33, %v1166_v22  ;;  %v2675_v22 = vld [vmem:[%s3827_s5 + $0x8] sm:$0xff] }
 0x254   : > { %1562 = vmatpush.bf16.msrb.mxu2 %v3240_v48  ;;  %1573 = vmatpush.bf16.msrb.mxu3 %v3245_v50  ;;  %v1192_v30 = vadd.f32 %v1191_v49, %v1179_v53 }
 0x256   : > { %1654 = vmatpush.bf16.msra.mxu0 %v3124_v13  ;;  %1665 = vmatpush.bf16.msra.mxu1 %v3096_v61  ;;  %v1193_v61 = vpop.f32.mrf.mxu2  ;;  %v1204_v13 = vpop.f32.mrf.mxu3 }
 0x257   : > { %v1205_v37 = vadd.f32 %v1204_v13, %v1192_v30 }
 0x258   : > { %1563 = vmatpush.bf16.msrb.mxu2 %v3255_v51  ;;  %1574 = vmatpush.bf16.msrb.mxu3 %v3260_v54 }
 0x259   : > { %v1208_v31 = vmax.f32 %v1205_v37, 0.0 }
 0x25a   : > { %1655 = vmatpush.bf16.msra.mxu0 %v3145_v21  ;;  %1666 = vmatpush.bf16.msra.mxu1 %v3117_v6  ;;  %v1340_v6 = vpop.f32.mrf.mxu1 }
 0x25b   : > { %v1209_v21 = vpack.c.bf16 %v1208_v31, %v1208_v31 }
 0x25c   : > { %1564 = vmatpush.bf16.msrb.mxu2 %v3268_v55  ;;  %1575 = vmatpush.bf16.msrb.mxu3 %v3273_v56 }
 0x25d   : > { %v1707_v38 = vunpack.c.l.b16 %v1209_v21 }
 0x25e   : > { %1656 = vmatpush.bf16.msra.mxu0 %v3159_v28  ;;  %1667 = vmatpush.bf16.msra.mxu1 %v3131_v14  ;;  %v1206_v14 = vpop.f32.mrf.mxu3 }
 0x25f   : > { %v1708_v28 = vpack.c.b16 %v1707_v38, %v1707_v38 }
 0x260   : > { %1565 = vmatpush.bf16.msrb.mxu2 %v3283_v57  ;;  %1576 = vmatpush.bf16.msrb.mxu3 %v3288_v58 }
 0x261   : > { %1709 = vrot.lane.b32.xlu0 %v1708_v28, %s2822_s16 }
 0x262   : > { %1657 = vmatpush.bf16.msra.mxu0 %v3179_v34  ;;  %1668 = vmatpush.bf16.msra.mxu1 %v3152_v23  ;;  %v1385_v23 = vpop.f32.mrf.mxu0 }
 0x263   : > { %1566 = vmatmul.bf16.vlgmr.msrb.gmra.mxu2 %v3398_v25  ;;  %v1386_v10 = vadd.f32 %v1385_v23, %v3522_v4 }
 0x264   : > { %1618 = vmatpush.bf16.msra.mxu2 %v3185_v35  ;;  %1577 = vmatpush.bf16.msrb.mxu3 %v3298_v63 }
 0x265   : > { %1658 = vmatmul.bf16.vlgmr.msra.gmra.mxu0 %v1430_v17 }
 0x266   : > { %1669 = vmatpush.bf16.msra.mxu1 %v3166_v29  ;;  %v1253_v29 = vpop.f32.mrf.mxu2  ;;  %2034 = vmatpush.bf16.msrb.mxu0 %v2681_v62  ;;  %v2709_v62 = vld [vmem:[%s3827_s5 + $0x118] sm:$0xff] }
 0x267   : > { %v1254_v34 = vadd.f32 %v1253_v29, %v3546_v59  ;;  %v1142_v29 = vmax.f32 %v3554_v27, 0.0  ;;  %v2687_v27 = vld [vmem:[%s3827_s5 + $0x68] sm:$0xff] }
 0x268   : > { %1619 = vmatpush.bf16.msra.mxu2 %v3199_v40  ;;  %1578 = vmatpush.bf16.msrb.mxu3 %v3305_v0 }
 0x26a   : > { %1670 = vmatpush.bf16.msra.mxu1 %v3204_v41  ;;  %v1387_v41 = vpop.f32.mrf.mxu0  ;;  %v1398_v39 = vpop.f32.mrf.mxu1 }
 0x26b   : > { %1579 = vmatmul.bf16.vlgmr.msrb.gmra.mxu3 %v3412_v36  ;;  %v3609_v2 = vadd.f32 %v1398_v39, %v1386_v10  ;;  %v2689_v41 = vld [vmem:[%s3827_s5 + $0x78] sm:$0xff] }
 0x26c   : > { %1620 = vmatpush.bf16.msra.mxu2 %v3216_v43  ;;  %1631 = vmatpush.bf16.msra.mxu3 %v3209_v42 }
 0x26d   : > { %1671 = vmatmul.bf16.vlgmr.msra.gmra.mxu1 %v1431_v15 }
 0x26e   : > { %v1255_v3 = vpop.f32.mrf.mxu2  ;;  %v1266_v33 = vpop.f32.mrf.mxu3  ;;  %2047 = vmatpush.bf16.msrb.mxu1 %v2689_v41  ;;  %v2704_v41 = vld [vmem:[%s3827_s5 + $0xf0] sm:$0xff] }
 0x26f   : > { %v3613_v7 = vadd.f32 %v1266_v33, %v1254_v34  ;;  %v2688_v33 = vld [vmem:[%s3827_s5 + $0x70] sm:$0xff] }
 0x270   : > { %1621 = vmatpush.bf16.msra.mxu2 %v3227_v45  ;;  %1632 = vmatpush.bf16.msra.mxu3 %v3232_v47 }
 0x272   : > { %v1400_v9 = vpop.f32.mrf.mxu1  ;;  %2048 = vmatpush.bf16.msrb.mxu1 %v2688_v33  ;;  %v2700_v33 = vld [vmem:[%s3827_s5 + $0xd0] sm:$0xff] }
 0x274   : > { %1622 = vmatpush.bf16.msra.mxu2 %v3240_v48  ;;  %1633 = vmatpush.bf16.msra.mxu3 %v3245_v50 }
 0x276   : > { %v1268_v44 = vpop.f32.mrf.mxu3  ;;  %2049 = vmatpush.bf16.msrb.mxu1 %v2687_v27 }
 0x278   : > { %1623 = vmatpush.bf16.msra.mxu2 %v3255_v51  ;;  %1634 = vmatpush.bf16.msra.mxu3 %v3260_v54 }
 0x27c   : > { %1624 = vmatpush.bf16.msra.mxu2 %v3268_v55  ;;  %1635 = vmatpush.bf16.msra.mxu3 %v3273_v56 }
 0x280   : > { %1625 = vmatpush.bf16.msra.mxu2 %v3283_v57  ;;  %1636 = vmatpush.bf16.msra.mxu3 %v3288_v58 }
 0x283   : > { %1626 = vmatmul.bf16.vlgmr.msra.gmra.mxu2 %v1588_v8 }
 0x284   : > { %1676 = vmatpush.bf16.msrb.mxu2 %v3185_v35  ;;  %1637 = vmatpush.bf16.msra.mxu3 %v3298_v63  ;;  %v1443_v35 = vpop.f32.mrf.mxu0 }
 0x285   : > { %v1444_v13 = vadd.f32 %v1443_v35, %v3522_v4 }
 0x286   : > { %v1351_v16 = vpop.f32.mrf.mxu2 }
 0x288   : > { %1677 = vmatpush.bf16.msrb.mxu2 %v3199_v40  ;;  %1638 = vmatpush.bf16.msra.mxu3 %v3305_v0  ;;  %v1326_v40 = vadd.f32 %v3561_v32, %v3522_v4 }
 0x28a   : > { %v1456_v17 = vpop.f32.mrf.mxu1 }
 0x28b   : > { %1639 = vmatmul.bf16.vlgmr.msra.gmra.mxu3 %v1589_v12  ;;  %v1457_v31 = vadd.f32 %v1456_v17, %v1444_v13  ;;  %v2686_v12 = vld [vmem:[%s3827_s5 + $0x60] sm:$0xff]  ;;  %v2692_v13 = vld [vmem:[%s3827_s5 + $0x90] sm:$0xff] }
 0x28c   : > { %1678 = vmatpush.bf16.msrb.mxu2 %v3216_v43  ;;  %1689 = vmatpush.bf16.msrb.mxu3 %v3209_v42  ;;  %v1445_v43 = vpop.f32.mrf.mxu0  ;;  %v1339_v42 = vadd.f32 %v3575_v1, %v1326_v40  ;;  %v2674_v1 = vld [vmem:[%s3827_s5] sm:$0xff] }
 0x28d   : > { %2050 = vmatpush.bf16.msrb.mxu1 %v2686_v12 }
 0x290   : > { %1679 = vmatpush.bf16.msrb.mxu2 %v3227_v45  ;;  %1690 = vmatpush.bf16.msrb.mxu3 %v3232_v47  ;;  %v1352_v45 = vadd.f32 %v1351_v16, %v1339_v42  ;;  %v1353_v47 = vpop.f32.mrf.mxu2  ;;  %v2685_v16 = vld [vmem:[%s3827_s5 + $0x58] sm:$0xff]  ;;  %v2684_v42 = vld [vmem:[%s3827_s5 + $0x50] sm:$0xff] }
 0x291   : > { %2051 = vmatpush.bf16.msrb.mxu1 %v2685_v16 }
 0x292   : > { %v1458_v19 = vpop.f32.mrf.mxu1 }
 0x294   : > { %1680 = vmatpush.bf16.msrb.mxu2 %v3240_v48  ;;  %1691 = vmatpush.bf16.msrb.mxu3 %v3245_v50  ;;  %v1364_v48 = vpop.f32.mrf.mxu3 }
 0x295   : > { %v1365_v50 = vadd.f32 %v1364_v48, %v1352_v45  ;;  %2052 = vmatpush.bf16.msrb.mxu1 %v2684_v42  ;;  %v2683_v48 = vld [vmem:[%s3827_s5 + $0x48] sm:$0xff] }
 0x297   : > { %v1368_v18 = vmax.f32 %v1365_v50, 0.0 }
 0x298   : > { %1681 = vmatpush.bf16.msrb.mxu2 %v3255_v51  ;;  %1692 = vmatpush.bf16.msrb.mxu3 %v3260_v54  ;;  %v1646_v51 = vrot.slane %v3398_v25, 2  ;;  %v2679_v25 = vld [vmem:[%s3827_s5 + $0x28] sm:$0xff] }
 0x299   : > { %v1369_v54 = vpack.c.bf16 %v1368_v18, %v1368_v18  ;;  %2053 = vmatpush.bf16.msrb.mxu1 %v2683_v48 }
 0x29b   : > { %v1712_v20 = vunpack.c.l.b16 %v1369_v54 }
 0x29c   : > { %1682 = vmatpush.bf16.msrb.mxu2 %v3268_v55  ;;  %1693 = vmatpush.bf16.msrb.mxu3 %v3273_v56  ;;  %v1366_v55 = vpop.f32.mrf.mxu3  ;;  %v2680_v56 = vld [vmem:[%s3827_s5 + $0x30] sm:$0xff] }
 0x29d   : > { %2035 = vmatpush.bf16.msrb.mxu0 %v2680_v56 }
 0x2a0   : > { %1683 = vmatpush.bf16.msrb.mxu2 %v3283_v57  ;;  %1694 = vmatpush.bf16.msrb.mxu3 %v3288_v58  ;;  %v1713_v57 = vpack.c.b16 %v1712_v20, %v1712_v20  ;;  %v1647_v58 = vrot.slane %v3412_v36, 2  ;;  %v2708_v20 = vld [vmem:[%s3827_s5 + $0x110] sm:$0xff] }
 0x2a1   : > { %2036 = vmatpush.bf16.msrb.mxu0 %v2679_v25 }
 0x2a2   : > { %1714 = vrot.lane.b32.xlu0 %v1713_v57, %s2822_s16  ;;  %v2707_v57 = vld [vmem:[%s3827_s5 + $0x108] sm:$0xff] }
 0x2a3   : > { %1684 = vmatmul.bf16.vlgmr.msrb.gmra.mxu2 %v1646_v51  ;;  %v2682_v51 = vld [vmem:[%s3827_s5 + $0x40] sm:$0xff] }
 0x2a4   : > { %1695 = vmatpush.bf16.msrb.mxu3 %v3298_v63  ;;  %v1541_v63 = vpop.f32.mrf.mxu0  ;;  %2054 = vmatpush.bf16.msrb.mxu1 %v2682_v51 }
 0x2a5   : > { %2037 = vmatpush.bf16.msrb.mxu0 %v2678_v24  ;;  %v1542_v36 = vadd.f32 %v1541_v63, %v3522_v4 }
 0x2a6   : > { %v1411_v11 = vpop.f32.mrf.mxu2 }
 0x2a7   : > { %v1412_v59 = vadd.f32 %v1411_v11, %v3609_v2  ;;  %v1143_v2 = vpack.c.bf16 %v1142_v29, %v1142_v29  ;;  %v2706_v11 = vld [vmem:[%s3827_s5 + $0x100] sm:$0xff] }
 0x2a8   : > { %1696 = vmatpush.bf16.msrb.mxu3 %v3305_v0  ;;  %v2677_v0 = vld [vmem:[%s3827_s5 + $0x18] sm:$0xff] }
 0x2a9   : > { %2038 = vmatpush.bf16.msrb.mxu0 %v2677_v0  ;;  %v1270_v0 = vmax.f32 %v3613_v7, 0.0  ;;  %v2695_v7 = vld [vmem:[%s3827_s5 + $0xa8] sm:$0xff] }
 0x2aa   : > { %v1554_v26 = vpop.f32.mrf.mxu1 }
 0x2ab   : > { %1697 = vmatmul.bf16.vlgmr.msrb.gmra.mxu3 %v1647_v58  ;;  %v1555_v15 = vadd.f32 %v1554_v26, %v1542_v36  ;;  %v2697_v26 = vld [vmem:[%s3827_s5 + $0xb8] sm:$0xff] }
 0x2ac   : > { %v1543_v46 = vpop.f32.mrf.mxu0  ;;  %2060 = vmatpush.bf16.msra.mxu2 %v2697_v26 }
 0x2ad   : > { %2039 = vmatpush.bf16.msrb.mxu0 %v2676_v52 }
 0x2ae   : > { %v1413_v32 = vpop.f32.mrf.mxu2  ;;  %v1424_v60 = vpop.f32.mrf.mxu3 }
 0x2af   : > { %v3663_v49 = vadd.f32 %v1424_v60, %v1412_v59  ;;  %v2696_v32 = vld [vmem:[%s3827_s5 + $0xb0] sm:$0xff] }
 0x2b0   : > { %2061 = vmatpush.bf16.msra.mxu2 %v2696_v32 }
 0x2b1   : > { %2040 = vmatpush.bf16.msrb.mxu0 %v2675_v22 }
 0x2b2   : > { %v1556_v5 = vpop.f32.mrf.mxu1 }
 0x2b4   : > { %2062 = vmatpush.bf16.msra.mxu2 %v2695_v7 }
 0x2b5   : > { %2041 = vmatpush.bf16.msrb.mxu0 %v2674_v1 }
 0x2b6   : > { %v1426_v53 = vpop.f32.mrf.mxu3 }
 0x2b7   : > { %v2694_v53 = vld [vmem:[%s3827_s5 + $0xa0] sm:$0xff] }
 0x2b8   : > { %2063 = vmatpush.bf16.msra.mxu2 %v2694_v53 }
 0x2b9   : > { %2090 = vmatpush.bf16.msra.mxu0 %v2709_v62  ;;  %v2713_v62 = vld [vmem:[%s3829_s7 + $0x18] sm:$0xff] }
 0x2ba   : > { %2140 = vmatpush.bf16.msra.mxu1 %v2713_v62 }
 0x2bd   : > { %2091 = vmatpush.bf16.msra.mxu0 %v2708_v20 }
 0x2c1   : > { %2092 = vmatpush.bf16.msra.mxu0 %v2707_v57 }
 0x2c2   : > { %v1601_v30 = vpop.f32.mrf.mxu0 }
 0x2c3   : > { %v1602_v56 = vadd.f32 %v1601_v30, %v3522_v4  ;;  %v2693_v30 = vld [vmem:[%s3827_s5 + $0x98] sm:$0xff] }
 0x2c4   : > { %2064 = vmatpush.bf16.msra.mxu2 %v2693_v30 }
 0x2c5   : > { %2093 = vmatpush.bf16.msra.mxu0 %v2706_v11 }
 0x2c6   : > { %v1469_v61 = vpop.f32.mrf.mxu2 }
 0x2c7   : > { %v1470_v21 = vadd.f32 %v1469_v61, %v1457_v31 }
 0x2c8   : > { %2065 = vmatpush.bf16.msra.mxu2 %v2692_v13 }
 0x2ca   : > { %v1603_v37 = vpop.f32.mrf.mxu0  ;;  %v1614_v6 = vpop.f32.mrf.mxu1 }
 0x2cb   : > { %v1615_v58 = vadd.f32 %v1614_v6, %v1602_v56  ;;  %v2691_v6 = vld [vmem:[%s3827_s5 + $0x88] sm:$0xff]  ;;  %v2710_v56 = vld [vmem:[%s3829_s7] sm:$0xff] }
 0x2cc   : > { %2066 = vmatpush.bf16.msra.mxu2 %v2691_v6 }
 0x2ce   : > { %v1471_v38 = vpop.f32.mrf.mxu2  ;;  %v1482_v14 = vpop.f32.mrf.mxu3 }
 0x2cf   : > { %v1483_v28 = vadd.f32 %v1482_v14, %v1470_v21 }
 0x2d1   : > { %v1486_v23 = vmax.f32 %v1483_v28, 0.0 }
 0x2d2   : > { %v1616_v10 = vpop.f32.mrf.mxu1 }
 0x2d3   : > { %v1487_v34 = vpack.c.bf16 %v1486_v23, %v1486_v23  ;;  %v1710_v9 = vpop.permute.xlu0 %1709  ;;  %v2690_v23 = vld [vmem:[%s3827_s5 + $0x80] sm:$0xff]  ;;  %v2705_v10 = vld [vmem:[%s3827_s5 + $0xf8] sm:$0xff] }
 0x2d4   : > { %v1728_v44 = vsel %vm475_vm0, %v1143_v2, %v1710_v9  ;;  %2067 = vmatpush.bf16.msra.mxu2 %v2690_v23  ;;  %2073 = vmatpush.bf16.msra.mxu3 %v2705_v10  ;;  %v2702_v2 = vld [vmem:[%s3827_s5 + $0xe0] sm:$0xff]  ;;  %v1428_v9 = vmax.f32 %v3663_v49, 0.0 }
 0x2d5   : > { %v1717_v39 = vunpack.c.l.b16 %v1487_v34  ;;  %2042 = vmatmul.bf16.vlgmr.msrb.gmra.mxu0 %v1728_v44  ;;  %v2698_v44 = vld [vmem:[%s3827_s5 + $0xc0] sm:$0xff] }
 0x2d6   : > { %v1484_v3 = vpop.f32.mrf.mxu3  ;;  %v1429_v27 = vpack.c.bf16 %v1428_v9, %v1428_v9  ;;  %v1814_v49 = vld [vmem:[%s3828_s6] sm:$0x1] }
 0x2d7   : > { %v1718_v8 = vpack.c.b16 %v1717_v39, %v1717_v39  ;;  %v2703_v39 = vld [vmem:[%s3827_s5 + $0xe8] sm:$0xff]  ;;  %v2701_v3 = vld [vmem:[%s3827_s5 + $0xd8] sm:$0xff] }
 0x2d8   : > { %2074 = vmatpush.bf16.msra.mxu3 %v2704_v41 }
 0x2d9   : > { %1719 = vrot.lane.b32.xlu1 %v1718_v8, %s2822_s16  ;;  %v2699_v8 = vld [vmem:[%s3827_s5 + $0xc8] sm:$0xff] }
 0x2dc   : > { %2075 = vmatpush.bf16.msra.mxu3 %v2703_v39 }
 0x2e0   : > { %2076 = vmatpush.bf16.msra.mxu3 %v2702_v2 }
 0x2e2   : > { %v1659_v35 = vpop.f32.mrf.mxu0 }
 0x2e3   : > { %v1660_v37 = vadd.f32 %v1659_v35, %v3522_v4 }
 0x2e4   : > { %2077 = vmatpush.bf16.msra.mxu3 %v2701_v3 }
 0x2e6   : > { %v1567_v40 = vpop.f32.mrf.mxu2 }
 0x2e7   : > { %v1568_v43 = vadd.f32 %v1567_v40, %v1555_v15  ;;  %v1271_v15 = vpack.c.bf16 %v1270_v0, %v1270_v0 }
 0x2e8   : > { %2078 = vmatpush.bf16.msra.mxu3 %v2700_v33 }
 0x2ea   : > { %v1661_v17 = vpop.f32.mrf.mxu0  ;;  %v1672_v45 = vpop.f32.mrf.mxu1 }
 0x2eb   : > { %v1673_v31 = vadd.f32 %v1672_v45, %v1660_v37 }
 0x2ec   : > { %2079 = vmatpush.bf16.msra.mxu3 %v2699_v8 }
 0x2ee   : > { %v1580_v47 = vpop.f32.mrf.mxu3  ;;  %v1569_v50 = vpop.f32.mrf.mxu2 }
 0x2ef   : > { %v3696_v18 = vadd.f32 %v1580_v47, %v1568_v43 }
 0x2f0   : > { %2080 = vmatpush.bf16.msra.mxu3 %v2698_v44 }
 0x2f1   : > { %v1584_v43 = vmax.f32 %v3696_v18, 0.0  ;;  %v2712_v18 = vld [vmem:[%s3829_s7 + $0x10] sm:$0xff] }
 0x2f2   : > { %v1674_v54 = vpop.f32.mrf.mxu1  ;;  %2141 = vmatpush.bf16.msra.mxu1 %v2712_v18 }
 0x2f3   : > { %v1585_v42 = vpack.c.bf16 %v1584_v43, %v1584_v43 }
 0x2f6   : > { %v1582_v19 = vpop.f32.mrf.mxu3 }
 0x306   : > { %v1627_v55 = vpop.f32.mrf.mxu2 }
 0x307   : > { %v1628_v25 = vadd.f32 %v1627_v55, %v1615_v58  ;;  %v2711_v55 = vld [vmem:[%s3829_s7 + $0x8] sm:$0xff] }
 0x308   : > { %2142 = vmatpush.bf16.msra.mxu1 %v2711_v55 }
 0x30c   : > { %2143 = vmatpush.bf16.msra.mxu1 %v2710_v56 }
 0x30e   : > { %v1629_v63 = vpop.f32.mrf.mxu2  ;;  %v1640_v24 = vpop.f32.mrf.mxu3 }
 0x30f   : > { %v1641_v59 = vadd.f32 %v1640_v24, %v1628_v25 }
 0x311   : > { %v1644_v36 = vmax.f32 %v1641_v59, 0.0 }
 0x313   : > { %v1645_v46 = vpack.c.bf16 %v1644_v36, %v1644_v36  ;;  %v1704_v36 = vld [vmem:[%s3830_s8] sm:$0x1] }
 0x314   : > { %v1715_v22 = vpop.permute.xlu0 %1714 }
 0x315   : > { %v1722_v52 = vunpack.c.l.b16 %v1645_v46  ;;  %v1732_v1 = vsel %vm475_vm0, %v1271_v15, %v1715_v22 }
 0x316   : > { %v1642_v60 = vpop.f32.mrf.mxu3  ;;  %2055 = vmatmul.bf16.vlgmr.msrb.gmra.mxu1 %v1732_v1 }
 0x317   : > { %v1723_v5 = vpack.c.b16 %v1722_v52, %v1722_v52 }
 0x319   : > { %1724 = vrot.lane.b32.xlu2 %v1723_v5, %s2822_s16  ;;  %s324_s16 = scalar_lea.vmem [#allocation2], %s323_s27 }
 0x31a   : > { %s2163_s22 = sshll.u32 %s324_s16, 4  ;;  %s2164_s22 = int_to_ptr.vmem [resolvable:$true] %s2163_s22 }
 0x326   : > { %v1685_v61 = vpop.f32.mrf.mxu2 }
 0x327   : > { %v1686_v21 = vadd.f32 %v1685_v61, %v1673_v31 }
 0x32e   : > { %v1687_v38 = vpop.f32.mrf.mxu2  ;;  %v1698_v14 = vpop.f32.mrf.mxu3 }
 0x32f   : > { %v1699_v28 = vadd.f32 %v1698_v14, %v1686_v21 }
 0x331   : > { %v1702_v29 = vmax.f32 %v1699_v28, 0.0 }
 0x333   : > { %v1703_v34 = vpack.c.bf16 %v1702_v29, %v1702_v29 }
 0x335   : > { %2597 = vmatmul.msk.bf16.vlgmr.msra.gmra.mxu0 %vm475_vm0, %v1703_v34 }
 0x336   : > { %v1700_v4 = vpop.f32.mrf.mxu3 }
 0x34b   : > { %v1720_v12 = vpop.permute.xlu1 %1719 }
 0x34c   : > { %v1736_v35 = vsel %vm475_vm0, %v1429_v27, %v1720_v12 }
 0x34d   : > { %2068 = vmatmul.bf16.vlgmr.msra.gmra.mxu2 %v1736_v35 }
 0x352   : > { %v2043_v16 = vpop.f32.mrf.mxu0 }
 0x353   : > { %v2044_v47 = vadd.f32 %v2043_v16, %v1814_v49 }
 0x35a   : > { %v2045_v40 = vpop.f32.mrf.mxu0 }
 0x373   : > { %v1725_v17 = vpop.permute.xlu2 %1724 }
 0x374   : > { %v1740_v45 = vsel %vm475_vm0, %v1585_v42, %v1725_v17 }
 0x375   : > { %2081 = vmatmul.bf16.vlgmr.msra.gmra.mxu3 %v1740_v45 }
 0x393   : > { %v2056_v48 = vpop.f32.mrf.mxu1 }
 0x394   : > { %v2057_v50 = vadd.f32 %v2056_v48, %v2044_v47 }
 0x39b   : > { %v2058_v51 = vpop.f32.mrf.mxu1 }
 0x3b2   : > { %v2095_v54 = vpop.f32.mrf.mxu0 }
 0x3ba   : > { %v2097_v19 = vpop.f32.mrf.mxu0 }
 0x3d0   : > { %v2069_v20 = vpop.f32.mrf.mxu2 }
 0x3d1   : > { %v2070_v58 = vadd.f32 %v2069_v20, %v2057_v50 }
 0x3d8   : > { %v2071_v57 = vpop.f32.mrf.mxu2 }
 0x3f8   : > { %v2082_v25 = vpop.f32.mrf.mxu3 }
 0x3f9   : > { %v2083_v63 = vadd.f32 %v2082_v25, %v2070_v58 }
 0x3fb   : > { %v2096_v24 = vadd.f32 %v2095_v54, %v2083_v63 }
 0x3fd   : > { %v2099_v11 = vmax.f32 %v2096_v24, 0.0 }
 0x3ff   : > { %v2100_v59 = vpack.c.bf16 %v2099_v11, %v2099_v11 }
 0x400   : > { %v2084_v0 = vpop.f32.mrf.mxu3 }
 0x401   : > { %2614 = vmatmul.msk.bf16.vlgmr.msra.gmra.mxu1 %vm475_vm0, %v2100_v59 }
 0x47e   : > { %v2145_v46 = vpop.f32.mrf.mxu1 }
 0x47f   : > { %v2149_v26 = vadd.f32 %v2145_v46, %v1704_v36 }
 0x481   : > { %2151 = vst.msk [vmem:[%s324_s16] sm:$0x1] %vm2150_vm3, %v2149_v26 }
 0x482   : > { %2785 = shalt.err (!%p2782_p3)
}
 0x483   : > { %2715 = dma.vmem_to_hbm [thread:$0]  (%p2913_p5), %s2164_s22, 16, %s2166_s23, %s2153_s24  }
 0x486   : > { %v2147_v15 = vpop.f32.mrf.mxu1 }
 0x487 PF: > { %p2721_p4 = scmp.ge.s32.totalorder %s2820_s12, 2  ;;  %s2177_s27 = sand.u32 1, %s2808_s30  }
 0x488   : > { %s2178_s21 = scalar_lea.sflag [#allocation3], %s2177_s27 }
 0x489   : > { %p2718_p7 = pnand %p2721_p4, %p2917_p6 }
 0x48b   : > { %p2719_p8 = pneg %p2718_p7 }
 0x48d   : > { %2803 = dma.done.wait (%p2719_p8), %s2178_s21, 16  }
 0x48e   : > { %2805 = vsyncadd (%p2719_p8), %s2178_s21, 4294967280  ;;  %p19_p9 = scmp.ge.s32.totalorder %s2900_s15, 4   ;;  %s3834_s30 = smov %s2812_s10 }
 0x48f   : > { %s3835_s10 = smov %s2816_s11  ;;  %s3836_s11 = smov %s2911_s18 }
 0x490   : > { %s3837_s12 = smov %s2900_s15  ;;  %21 = sbr.rel (!%p19_p9) target bundleno = 3 (0x3), region = 91 }
 0x495   :  { %2183 = vsyncpa [#allocation3], 1 }
 0x496   :  { %2185 = vsyncpa [#allocation3 + $0x1], 1 }

</bundles_post_ra>
